<compile_context>
chip_gen: v6e
topology: v6e:2x2x1
jax: 0.10.0
libtpu: 0.0.40
codegen_flags: <defaults>
</compile_context>

<pallas_src>
import functools

import jax
import jax.numpy as jnp
from jax.experimental import pallas as pl
from jax.experimental.pallas import tpu as pltpu


# ---------------------------------------------------------------------------
# Kernel: one grid step = windowed MHSA for a block of Bblk = bb*nW windows.
# ---------------------------------------------------------------------------
def window_attention_kernel(x_ref, wqkv_ref, bqkv_ref, wproj_ref, bproj_ref,
                            bm_ref, o_ref, oheads_ref, *, num_heads, nW):
    bblk, n_tok, C = x_ref.shape
    c = C // num_heads
    bb = bblk // nW
    M = bblk * n_tok

    # Collapse the window block to a single (M, C) operand so every projection
    # matmul presents M = Bblk*N rows to the MXU (leading-dim merge only).
    x = x_ref[...].reshape(M, C).astype(jnp.bfloat16)

    # ONE full-width QKV projection: (M, C) @ (C, 3C), f32 accumulation.
    # The qk scale is pre-folded into the Q columns of wqkv / bqkv (done once
    # in the constant-prep step, not per forward).
    qkv = (jnp.dot(x, wqkv_ref[...], preferred_element_type=jnp.float32)
           + bqkv_ref[...]).astype(jnp.bfloat16)                     # (M, 3C)

    # Per-head attention.  Head split is a static lane slice (VPU/XLU slack);
    # all FLOP-dominant matmuls stay full width.
    for h in range(num_heads):
        q3 = qkv[:, 0 * C + h * c:0 * C + (h + 1) * c].reshape(bblk, n_tok, c)
        k3 = qkv[:, 1 * C + h * c:1 * C + (h + 1) * c].reshape(bblk, n_tok, c)
        v3 = qkv[:, 2 * C + h * c:2 * C + (h + 1) * c].reshape(bblk, n_tok, c)

        s = jnp.einsum('bnc,bmc->bnm', q3, k3,
                       preferred_element_type=jnp.float32)           # (Bblk, N, N)

        # Fused rel-pos bias + shift mask, deduplicated to (nW, N, N) per head,
        # broadcast over the bb batch groups of this block.  Relies on the
        # batch-major / window-minor row ordering (row = b*nW + w).
        s = (s.reshape(bb, nW, n_tok, n_tok) + bm_ref[h][None]
             ).reshape(bblk, n_tok, n_tok)

        # f32 softmax; EUP approximate reciprocal for the normalization
        # (tiny deviation from exact softmax — fine for this inference path).
        mx = jnp.max(s, axis=-1, keepdims=True)
        e = jnp.exp(s - mx)
        den = jnp.sum(e, axis=-1, keepdims=True)
        p = e * pl.reciprocal(den, approx=True)
        # TODO(synk): attn_drop / proj_drop are identity at p=0.0 (module default).

        o = jnp.einsum('bnm,bmc->bnc', p.astype(jnp.bfloat16), v3,
                       preferred_element_type=jnp.float32)           # (Bblk, N, c)

        # Deposit this head's output into its lane slot of the (M, C) buffer.
        oheads_ref[:, h * c:(h + 1) * c] = o.reshape(M, c).astype(jnp.bfloat16)

    # ONE full-width, full-depth output projection: (M, C) @ (C, C).
    out = jnp.dot(oheads_ref[...], wproj_ref[...],
                  preferred_element_type=jnp.float32) + bproj_ref[...]
    o_ref[...] = out.reshape(bblk, n_tok, C).astype(o_ref.dtype)


# ---------------------------------------------------------------------------
# One-time (per layer) constant preparation — keep OFF the per-forward hot path.
# ---------------------------------------------------------------------------
def make_relative_position_index(window_size):
    Wh, Ww = window_size
    coords = jnp.stack(jnp.meshgrid(jnp.arange(Wh), jnp.arange(Ww), indexing="ij"))
    coords_flat = coords.reshape(2, -1)                               # (2, N)
    rel = coords_flat[:, :, None] - coords_flat[:, None, :]           # (2, N, N)
    rel = rel.transpose(1, 2, 0)                                      # (N, N, 2)
    rel = rel.at[:, :, 0].add(Wh - 1)
    rel = rel.at[:, :, 1].add(Ww - 1)
    rel = rel.at[:, :, 0].multiply(2 * Ww - 1)
    return rel.sum(-1)                                                # (N, N)


def prepare_window_attention_constants(params, window_size, num_heads,
                                       mask=None, qk_scale=None):
    """Rel-pos gather, bias+mask fusion (deduplicated to (H, nW, N, N)),
    qk-scale folding and bf16 weight packing.  Call once per layer and cache."""
    C = params["wqkv"].shape[0]
    assert C % num_heads == 0
    c = C // num_heads
    scale = qk_scale if qk_scale is not None else c ** (-0.5)
    Wh, Ww = window_size
    N = Wh * Ww

    rel_idx = make_relative_position_index(window_size)
    bias = params["rpb_table"][rel_idx.reshape(-1)]
    bias = bias.reshape(N, N, num_heads).transpose(2, 0, 1).astype(jnp.float32)

    if mask is None:
        mask = jnp.zeros((1, N, N), dtype=jnp.float32)
    nW = int(mask.shape[0])
    bias_mask = bias[:, None, :, :] + mask.astype(jnp.float32)[None, :, :, :]

    # Fold q*scale into the Q projection (free here; avoids a per-element mul
    # in the kernel and any per-forward wrapper op).
    wqkv = params["wqkv"].astype(jnp.float32)
    bqkv = params["bqkv"].astype(jnp.float32)
    wqkv = wqkv.at[:, :C].multiply(scale)
    bqkv = bqkv.at[:C].multiply(scale)

    return {
        "nW": nW,
        "N": N,
        "wqkv": wqkv.astype(jnp.bfloat16),                            # (C, 3C)
        "bqkv": bqkv.reshape(1, 3 * C),                               # (1, 3C) f32
        "wproj": params["wproj"].astype(jnp.bfloat16),                # (C, C)
        "bproj": params["bproj"].reshape(1, C).astype(jnp.float32),   # (1, C)
        "bias_mask": bias_mask,                                       # (H, nW, N, N) f32
    }


# ---------------------------------------------------------------------------
# VMEM-budget-driven block sizing.
# ---------------------------------------------------------------------------
def _vmem_limit_bytes():
    # ~75% of physical per-core VMEM (≈96 MiB on v5e/v6e, ≈48 MiB on v7x);
    # conservative 48 MiB fallback if the hardware query is unavailable.
    cap = 64 * 1024 * 1024
    try:
        info = pltpu.get_tpu_info()
        cap = int(getattr(info, "vmem_capacity_bytes", cap))
    except Exception:
        pass
    return int(cap * 3 // 4)


def _choose_batch_groups_per_block(batch, nW, N, C, num_heads,
                                   x_bytes, out_bytes,
                                   vmem_limit_bytes, min_steps=8):
    """Pick bb (batch groups of nW windows per grid step) from the VMEM budget,
    as a divisor of `batch`, keeping >= min_steps grid steps when possible so
    the input/output DMA pipeline has something to overlap."""
    per_bb = nW * N * (
        2 * C * x_bytes        # x block (pipeline double-buffered)
        + 2 * C * out_bytes    # output block (double-buffered)
        + 3 * C * 2            # bf16 qkv intermediate
        + 3 * C * 4            # f32 projection temporaries (headroom)
        + C * 2                # bf16 per-head output scratch
        + C * 4                # f32 proj result before the output cast
        + 3 * N * 4            # f32 scores / exp / probs (one head live)
    )
    const_bytes = 2 * ((3 * C * C + C * C) * 2        # wqkv + wproj (bf16)
                       + (3 * C + C) * 4              # bqkv + bproj (f32)
                       + num_heads * nW * N * N * 4)  # fused bias+mask (f32)
    budget = max(vmem_limit_bytes - const_bytes, per_bb)
    bb_mem_cap = max(1, budget // per_bb)
    bb_step_cap = max(1, batch // min_steps)
    bb_cap = min(batch, bb_mem_cap, bb_step_cap)
    divisors = [d for d in range(1, batch + 1) if batch % d == 0]
    return max(d for d in divisors if d <= bb_cap)


# ---------------------------------------------------------------------------
# Hot-path wrapper.
# ---------------------------------------------------------------------------
def window_attention(x, consts, num_heads, *, out_dtype=None, min_steps=8):
    """x: (B_, N, C), rows ordered batch-major / window-minor (row = b*nW + w).
    `consts` comes from prepare_window_attention_constants (cached per layer).
    out_dtype=jnp.bfloat16 halves output HBM traffic if the consumer allows."""
    B_, N, C = x.shape
    nW = consts["nW"]
    assert consts["N"] == N
    assert C % num_heads == 0
    assert B_ % nW == 0, "x rows must cover whole (batch, nW) window groups"
    batch = B_ // nW
    out_dtype = x.dtype if out_dtype is None else out_dtype

    vmem_limit = _vmem_limit_bytes()
    bb = _choose_batch_groups_per_block(
        batch, nW, N, C, num_heads,
        x_bytes=jnp.dtype(x.dtype).itemsize,
        out_bytes=jnp.dtype(out_dtype).itemsize,
        vmem_limit_bytes=vmem_limit, min_steps=min_steps)
    Bblk = bb * nW
    num_blocks = batch // bb

    kernel = functools.partial(window_attention_kernel,
                               num_heads=num_heads, nW=nW)

    # Advisory cost model (bias_mask counted once per grid step, not replicated).
    flops = int(B_ * N * (2 * C * 3 * C + 4 * N * C + 2 * C * C))
    transcendentals = int(B_ * num_heads * N * N)
    const_read = ((3 * C * C + C * C) * 2 + (3 * C + C) * 4
                  + num_heads * nW * N * N * 4)
    bytes_accessed = int(B_ * N * C * (jnp.dtype(x.dtype).itemsize
                                       + jnp.dtype(out_dtype).itemsize)
                         + num_blocks * const_read)

    # NOTE: the grid-invariant operands (weights / biases / bias_mask) could be
    # single-buffered via pipeline_mode=pl.Buffered(1); after the bias dedup
    # they are small, so default buffering is kept and the block-size budget
    # above simply charges them at 2x.
    grid_spec = pltpu.PrefetchScalarGridSpec(
        num_scalar_prefetch=0,
        grid=(num_blocks,),
        in_specs=[
            pl.BlockSpec((Bblk, N, C), lambda g: (g, 0, 0)),              # x
            pl.BlockSpec((C, 3 * C), lambda g: (0, 0)),                   # Wqkv (bf16)
            pl.BlockSpec((1, 3 * C), lambda g: (0, 0)),                   # bqkv (f32)
            pl.BlockSpec((C, C), lambda g: (0, 0)),                       # Wproj (bf16)
            pl.BlockSpec((1, C), lambda g: (0, 0)),                       # bproj (f32)
            pl.BlockSpec((num_heads, nW, N, N), lambda g: (0, 0, 0, 0)),  # bias+mask
        ],
        out_specs=pl.BlockSpec((Bblk, N, C), lambda g: (g, 0, 0)),
        scratch_shapes=[pltpu.VMEM((Bblk * N, C), jnp.bfloat16)],         # head outputs
    )

    return pl.pallas_call(
        kernel,
        out_shape=jax.ShapeDtypeStruct((B_, N, C), out_dtype),
        grid_spec=grid_spec,
        compiler_params=pltpu.CompilerParams(
            dimension_semantics=("parallel",),
            vmem_limit_bytes=vmem_limit),
        cost_estimate=pl.CostEstimate(flops=flops,
                                      transcendentals=transcendentals,
                                      bytes_accessed=bytes_accessed),
    )(x, consts["wqkv"], consts["bqkv"], consts["wproj"], consts["bproj"],
      consts["bias_mask"])


# ---------------------------------------------------------------------------
# Pure-JAX reference (mirrors the PyTorch forward exactly, f32)
# ---------------------------------------------------------------------------
def window_attention_ref(x, params, window_size, num_heads, mask):
    B_, N, C = x.shape
    head_dim = C // num_heads
    scale = head_dim ** (-0.5)

    qkv = x @ params["wqkv"] + params["bqkv"]                             # (B_, N, 3C)
    qkv = qkv.reshape(B_, N, 3, num_heads, head_dim).transpose(2, 0, 3, 1, 4)
    q, k, v = qkv[0], qkv[1], qkv[2]                                      # (B_, H, N, c)
    q = q * scale
    attn = q @ jnp.swapaxes(k, -2, -1)                                    # (B_, H, N, N)

    rel_idx = make_relative_position_index(window_size)
    bias = params["rpb_table"][rel_idx.reshape(-1)].reshape(N, N, num_heads)
    bias = bias.transpose(2, 0, 1)                                        # (H, N, N)
    attn = attn + bias[None]

    nW = mask.shape[0]
    attn = attn.reshape(B_ // nW, nW, num_heads, N, N) + mask[None, :, None]
    attn = attn.reshape(-1, num_heads, N, N)
    attn = jax.nn.softmax(attn, axis=-1)

    out = (attn @ v).transpose(0, 2, 1, 3).reshape(B_, N, C)
    out = out @ params["wproj"] + params["bproj"]
    return out


# ---------------------------------------------------------------------------
if __name__ == "__main__":
    # Small shapes: window 4x4 -> N=16, dim=32, 4 heads, batch=2, nW=4 -> B_=8.
    window_size = (4, 4)
    N = window_size[0] * window_size[1]          # 16
    dim = 32
    num_heads = 4
    batch = 2
    nW = 4
    B_ = batch * nW                              # 8 windows total

    key = jax.random.PRNGKey(0)
    k1, k2, k3, k4, k5, k6 = jax.random.split(key, 6)

    params = {
        "rpb_table": 0.02 * jax.random.normal(
            k1, ((2 * window_size[0] - 1) * (2 * window_size[1] - 1), num_heads),
            dtype=jnp.float32),
        "wqkv": 0.05 * jax.random.normal(k2, (dim, 3 * dim), dtype=jnp.float32),
        "bqkv": 0.05 * jax.random.normal(k3, (3 * dim,), dtype=jnp.float32),
        "wproj": 0.05 * jax.random.normal(k4, (dim, dim), dtype=jnp.float32),
        "bproj": 0.05 * jax.random.normal(k5, (dim,), dtype=jnp.float32),
    }

    x = jax.random.normal(k6, (B_, N, dim), dtype=jnp.float32)

    # Deterministic additive (0 / -100) shifted-window style mask, shape (nW, N, N).
    ii = jnp.arange(N)
    blocky = (ii[:, None] // 8) == (ii[None, :] // 8)                     # (N, N) bool
    w_idx = jnp.arange(nW)[:, None, None]
    mask = jnp.where(blocky[None] | (w_idx % 2 == 0), 0.0, -100.0).astype(jnp.float32)

    # One-time, per-layer constant prep (cache this in a real model).
    consts = prepare_window_attention_constants(params, window_size, num_heads, mask)

    out = window_attention(x, consts, num_heads)
    out = jax.block_until_ready(out)

    ref = window_attention_ref(x, params, window_size, num_heads, mask)
    assert out.shape == (B_, N, dim)
    # bf16 matmul operands (f32 accumulation) -> loosened tolerance vs f32 reference.
    err = jnp.max(jnp.abs(out.astype(jnp.float32) - ref))
    assert jnp.allclose(out.astype(jnp.float32), ref, atol=2e-2, rtol=2e-2), (
        f"max abs err {err}")

    print("KERNEL_OK")
</pallas_src>

<mosaic_0001>
module attributes {stable_mosaic.version = 11 : i64} {
  func.func @window_attention_kernel(%arg0: i32, %arg1: memref<4x16x32xf32, #tpu.memory_space<vmem>>, %arg2: memref<32x96xbf16, #tpu.memory_space<vmem>>, %arg3: memref<1x96xf32, #tpu.memory_space<vmem>>, %arg4: memref<32x32xbf16, #tpu.memory_space<vmem>>, %arg5: memref<1x32xf32, #tpu.memory_space<vmem>>, %arg6: memref<4x4x16x16xf32, #tpu.memory_space<vmem>>, %arg7: memref<4x16x32xf32, #tpu.memory_space<vmem>>, %arg8: memref<64x32xbf16, #tpu.memory_space<vmem>>) attributes {dimension_semantics = [#tpu.dimension_semantics<parallel>], iteration_bounds = array<i64: 2>, scalar_prefetch = 0 : i64, scratch_operands = 1 : i64, tpu.core_type = #tpu.core_type<tc>, window_params = [{transform_indices = @transform_0, window_bounds = array<i64: 4, 16, 32>}, {pipeline_mode = #tpu.pipeline_mode<synchronous>, transform_indices = @transform_1, window_bounds = array<i64: 32, 96>}, {pipeline_mode = #tpu.pipeline_mode<synchronous>, transform_indices = @transform_2, window_bounds = array<i64: 1, 96>}, {pipeline_mode = #tpu.pipeline_mode<synchronous>, transform_indices = @transform_3, window_bounds = array<i64: 32, 32>}, {pipeline_mode = #tpu.pipeline_mode<synchronous>, transform_indices = @transform_4, window_bounds = array<i64: 1, 32>}, {pipeline_mode = #tpu.pipeline_mode<synchronous>, transform_indices = @transform_5, window_bounds = array<i64: 4, 4, 16, 16>}, {transform_indices = @transform_6, window_bounds = array<i64: 4, 16, 32>}]} {
    %c0 = arith.constant 0 : index
    %c0_0 = arith.constant 0 : index
    %c0_1 = arith.constant 0 : index
    %0 = vector.load %arg1[%c0, %c0_0, %c0_1] : memref<4x16x32xf32, #tpu.memory_space<vmem>>, vector<4x16x32xf32>
    %1 = vector.shape_cast %0 : vector<4x16x32xf32> to vector<64x32xf32>
    %2 = arith.truncf %1 : vector<64x32xf32> to vector<64x32xbf16>
    %c0_2 = arith.constant 0 : index
    %c0_3 = arith.constant 0 : index
    %3 = vector.load %arg2[%c0_2, %c0_3] : memref<32x96xbf16, #tpu.memory_space<vmem>>, vector<32x96xbf16>
    %cst = arith.constant dense<0.000000e+00> : vector<64x96xf32>
    %4 = tpu.matmul %2, %3, %cst {dimension_numbers = #tpu.dot_dimension_numbers<[1], [0], [0], [1], [0, 0, 1, 1], [], []>} : vector<64x32xbf16>, vector<32x96xbf16>, vector<64x96xf32> -> vector<64x96xf32>
    %c0_4 = arith.constant 0 : index
    %c0_5 = arith.constant 0 : index
    %5 = vector.load %arg3[%c0_4, %c0_5] : memref<1x96xf32, #tpu.memory_space<vmem>>, vector<1x96xf32>
    %6 = vector.broadcast %5 : vector<1x96xf32> to vector<64x96xf32>
    %7 = arith.addf %4, %6 : vector<64x96xf32>
    %8 = arith.truncf %7 : vector<64x96xf32> to vector<64x96xbf16>
    %9 = vector.extract_strided_slice %8 {offsets = [0, 0], sizes = [64, 8], strides = [1, 1]} : vector<64x96xbf16> to vector<64x8xbf16>
    %10 = vector.shape_cast %9 : vector<64x8xbf16> to vector<4x16x8xbf16>
    %11 = vector.extract_strided_slice %8 {offsets = [0, 32], sizes = [64, 8], strides = [1, 1]} : vector<64x96xbf16> to vector<64x8xbf16>
    %12 = vector.shape_cast %11 : vector<64x8xbf16> to vector<4x16x8xbf16>
    %13 = vector.extract_strided_slice %8 {offsets = [0, 64], sizes = [64, 8], strides = [1, 1]} : vector<64x96xbf16> to vector<64x8xbf16>
    %14 = vector.shape_cast %13 : vector<64x8xbf16> to vector<4x16x8xbf16>
    "tpu.trace_start"() <{level = 10 : i32, message = "bnc,bmc->bnm"}> : () -> ()
    %cst_6 = arith.constant dense<0.000000e+00> : vector<4x16x16xf32>
    %15 = tpu.matmul %10, %12, %cst_6 {dimension_numbers = #tpu.dot_dimension_numbers<[2], [2], [1], [1], [0, 0, 0, 1, 1, 1], [0], [0]>} : vector<4x16x8xbf16>, vector<4x16x8xbf16>, vector<4x16x16xf32> -> vector<4x16x16xf32>
    "tpu.trace_stop"() : () -> ()
    %16 = vector.shape_cast %15 : vector<4x16x16xf32> to vector<1x4x16x16xf32>
    %c0_7 = arith.constant 0 : index
    %c0_8 = arith.constant 0 : index
    %c0_9 = arith.constant 0 : index
    %c0_10 = arith.constant 0 : index
    %17 = vector.load %arg6[%c0_7, %c0_8, %c0_9, %c0_10] : memref<4x4x16x16xf32, #tpu.memory_space<vmem>>, vector<1x4x16x16xf32>
    %18 = vector.shape_cast %17 : vector<1x4x16x16xf32> to vector<4x16x16xf32>
    %19 = vector.shape_cast %18 : vector<4x16x16xf32> to vector<1x4x16x16xf32>
    %20 = arith.addf %16, %19 : vector<1x4x16x16xf32>
    %21 = vector.shape_cast %20 : vector<1x4x16x16xf32> to vector<4x16x16xf32>
    %cst_11 = arith.constant dense<0xFF800000> : vector<4x16xf32>
    %22 = vector.multi_reduction <maximumf>, %21, %cst_11 [2] : vector<4x16x16xf32> to vector<4x16xf32>
    %23 = vector.shape_cast %22 : vector<4x16xf32> to vector<4x16x1xf32>
    %24 = vector.broadcast %23 : vector<4x16x1xf32> to vector<4x16x16xf32>
    %25 = arith.subf %21, %24 : vector<4x16x16xf32>
    %26 = math.exp %25 : vector<4x16x16xf32>
    %cst_12 = arith.constant dense<0.000000e+00> : vector<4x16xf32>
    %27 = vector.multi_reduction <add>, %26, %cst_12 [2] : vector<4x16x16xf32> to vector<4x16xf32>
    %28 = vector.shape_cast %27 : vector<4x16xf32> to vector<4x16x1xf32>
    %29 = tpu.reciprocal %28 {approx = true} : vector<4x16x1xf32> -> vector<4x16x1xf32>
    %30 = vector.broadcast %29 : vector<4x16x1xf32> to vector<4x16x16xf32>
    %31 = arith.mulf %26, %30 : vector<4x16x16xf32>
    %32 = arith.truncf %31 : vector<4x16x16xf32> to vector<4x16x16xbf16>
    "tpu.trace_start"() <{level = 10 : i32, message = "bnm,bmc->bnc"}> : () -> ()
    %cst_13 = arith.constant dense<0.000000e+00> : vector<4x16x8xf32>
    %33 = tpu.matmul %32, %14, %cst_13 {dimension_numbers = #tpu.dot_dimension_numbers<[2], [1], [1], [2], [0, 0, 0, 1, 1, 2], [0], [0]>} : vector<4x16x16xbf16>, vector<4x16x8xbf16>, vector<4x16x8xf32> -> vector<4x16x8xf32>
    "tpu.trace_stop"() : () -> ()
    %34 = vector.shape_cast %33 : vector<4x16x8xf32> to vector<64x8xf32>
    %35 = arith.truncf %34 : vector<64x8xf32> to vector<64x8xbf16>
    %c0_14 = arith.constant 0 : index
    %c0_15 = arith.constant 0 : index
    %36 = vector.load %arg8[%c0_14, %c0_15] : memref<64x32xbf16, #tpu.memory_space<vmem>>, vector<64x8xbf16>
    tpu.vector_store %arg8[%c0_14, %c0_15], %35 {strides = array<i32>} : memref<64x32xbf16, #tpu.memory_space<vmem>>, vector<64x8xbf16>,
    %37 = vector.extract_strided_slice %8 {offsets = [0, 8], sizes = [64, 8], strides = [1, 1]} : vector<64x96xbf16> to vector<64x8xbf16>
    %38 = vector.shape_cast %37 : vector<64x8xbf16> to vector<4x16x8xbf16>
    %39 = vector.extract_strided_slice %8 {offsets = [0, 40], sizes = [64, 8], strides = [1, 1]} : vector<64x96xbf16> to vector<64x8xbf16>
    %40 = vector.shape_cast %39 : vector<64x8xbf16> to vector<4x16x8xbf16>
    %41 = vector.extract_strided_slice %8 {offsets = [0, 72], sizes = [64, 8], strides = [1, 1]} : vector<64x96xbf16> to vector<64x8xbf16>
    %42 = vector.shape_cast %41 : vector<64x8xbf16> to vector<4x16x8xbf16>
    "tpu.trace_start"() <{level = 10 : i32, message = "bnc,bmc->bnm"}> : () -> ()
    %cst_16 = arith.constant dense<0.000000e+00> : vector<4x16x16xf32>
    %43 = tpu.matmul %38, %40, %cst_16 {dimension_numbers = #tpu.dot_dimension_numbers<[2], [2], [1], [1], [0, 0, 0, 1, 1, 1], [0], [0]>} : vector<4x16x8xbf16>, vector<4x16x8xbf16>, vector<4x16x16xf32> -> vector<4x16x16xf32>
    "tpu.trace_stop"() : () -> ()
    %44 = vector.shape_cast %43 : vector<4x16x16xf32> to vector<1x4x16x16xf32>
    %c1 = arith.constant 1 : index
    %c0_17 = arith.constant 0 : index
    %c0_18 = arith.constant 0 : index
    %c0_19 = arith.constant 0 : index
    %45 = vector.load %arg6[%c1, %c0_17, %c0_18, %c0_19] : memref<4x4x16x16xf32, #tpu.memory_space<vmem>>, vector<1x4x16x16xf32>
    %46 = vector.shape_cast %45 : vector<1x4x16x16xf32> to vector<4x16x16xf32>
    %47 = vector.shape_cast %46 : vector<4x16x16xf32> to vector<1x4x16x16xf32>
    %48 = arith.addf %44, %47 : vector<1x4x16x16xf32>
    %49 = vector.shape_cast %48 : vector<1x4x16x16xf32> to vector<4x16x16xf32>
    %cst_20 = arith.constant dense<0xFF800000> : vector<4x16xf32>
    %50 = vector.multi_reduction <maximumf>, %49, %cst_20 [2] : vector<4x16x16xf32> to vector<4x16xf32>
    %51 = vector.shape_cast %50 : vector<4x16xf32> to vector<4x16x1xf32>
    %52 = vector.broadcast %51 : vector<4x16x1xf32> to vector<4x16x16xf32>
    %53 = arith.subf %49, %52 : vector<4x16x16xf32>
    %54 = math.exp %53 : vector<4x16x16xf32>
    %cst_21 = arith.constant dense<0.000000e+00> : vector<4x16xf32>
    %55 = vector.multi_reduction <add>, %54, %cst_21 [2] : vector<4x16x16xf32> to vector<4x16xf32>
    %56 = vector.shape_cast %55 : vector<4x16xf32> to vector<4x16x1xf32>
    %57 = tpu.reciprocal %56 {approx = true} : vector<4x16x1xf32> -> vector<4x16x1xf32>
    %58 = vector.broadcast %57 : vector<4x16x1xf32> to vector<4x16x16xf32>
    %59 = arith.mulf %54, %58 : vector<4x16x16xf32>
    %60 = arith.truncf %59 : vector<4x16x16xf32> to vector<4x16x16xbf16>
    "tpu.trace_start"() <{level = 10 : i32, message = "bnm,bmc->bnc"}> : () -> ()
    %cst_22 = arith.constant dense<0.000000e+00> : vector<4x16x8xf32>
    %61 = tpu.matmul %60, %42, %cst_22 {dimension_numbers = #tpu.dot_dimension_numbers<[2], [1], [1], [2], [0, 0, 0, 1, 1, 2], [0], [0]>} : vector<4x16x16xbf16>, vector<4x16x8xbf16>, vector<4x16x8xf32> -> vector<4x16x8xf32>
    "tpu.trace_stop"() : () -> ()
    %62 = vector.shape_cast %61 : vector<4x16x8xf32> to vector<64x8xf32>
    %63 = arith.truncf %62 : vector<64x8xf32> to vector<64x8xbf16>
    %c0_23 = arith.constant 0 : index
    %c8 = arith.constant 8 : index
    %64 = vector.load %arg8[%c0_23, %c8] : memref<64x32xbf16, #tpu.memory_space<vmem>>, vector<64x8xbf16>
    tpu.vector_store %arg8[%c0_23, %c8], %63 {strides = array<i32>} : memref<64x32xbf16, #tpu.memory_space<vmem>>, vector<64x8xbf16>,
    %65 = vector.extract_strided_slice %8 {offsets = [0, 16], sizes = [64, 8], strides = [1, 1]} : vector<64x96xbf16> to vector<64x8xbf16>
    %66 = vector.shape_cast %65 : vector<64x8xbf16> to vector<4x16x8xbf16>
    %67 = vector.extract_strided_slice %8 {offsets = [0, 48], sizes = [64, 8], strides = [1, 1]} : vector<64x96xbf16> to vector<64x8xbf16>
    %68 = vector.shape_cast %67 : vector<64x8xbf16> to vector<4x16x8xbf16>
    %69 = vector.extract_strided_slice %8 {offsets = [0, 80], sizes = [64, 8], strides = [1, 1]} : vector<64x96xbf16> to vector<64x8xbf16>
    %70 = vector.shape_cast %69 : vector<64x8xbf16> to vector<4x16x8xbf16>
    "tpu.trace_start"() <{level = 10 : i32, message = "bnc,bmc->bnm"}> : () -> ()
    %cst_24 = arith.constant dense<0.000000e+00> : vector<4x16x16xf32>
    %71 = tpu.matmul %66, %68, %cst_24 {dimension_numbers = #tpu.dot_dimension_numbers<[2], [2], [1], [1], [0, 0, 0, 1, 1, 1], [0], [0]>} : vector<4x16x8xbf16>, vector<4x16x8xbf16>, vector<4x16x16xf32> -> vector<4x16x16xf32>
    "tpu.trace_stop"() : () -> ()
    %72 = vector.shape_cast %71 : vector<4x16x16xf32> to vector<1x4x16x16xf32>
    %c2 = arith.constant 2 : index
    %c0_25 = arith.constant 0 : index
    %c0_26 = arith.constant 0 : index
    %c0_27 = arith.constant 0 : index
    %73 = vector.load %arg6[%c2, %c0_25, %c0_26, %c0_27] : memref<4x4x16x16xf32, #tpu.memory_space<vmem>>, vector<1x4x16x16xf32>
    %74 = vector.shape_cast %73 : vector<1x4x16x16xf32> to vector<4x16x16xf32>
    %75 = vector.shape_cast %74 : vector<4x16x16xf32> to vector<1x4x16x16xf32>
    %76 = arith.addf %72, %75 : vector<1x4x16x16xf32>
    %77 = vector.shape_cast %76 : vector<1x4x16x16xf32> to vector<4x16x16xf32>
    %cst_28 = arith.constant dense<0xFF800000> : vector<4x16xf32>
    %78 = vector.multi_reduction <maximumf>, %77, %cst_28 [2] : vector<4x16x16xf32> to vector<4x16xf32>
    %79 = vector.shape_cast %78 : vector<4x16xf32> to vector<4x16x1xf32>
    %80 = vector.broadcast %79 : vector<4x16x1xf32> to vector<4x16x16xf32>
    %81 = arith.subf %77, %80 : vector<4x16x16xf32>
    %82 = math.exp %81 : vector<4x16x16xf32>
    %cst_29 = arith.constant dense<0.000000e+00> : vector<4x16xf32>
    %83 = vector.multi_reduction <add>, %82, %cst_29 [2] : vector<4x16x16xf32> to vector<4x16xf32>
    %84 = vector.shape_cast %83 : vector<4x16xf32> to vector<4x16x1xf32>
    %85 = tpu.reciprocal %84 {approx = true} : vector<4x16x1xf32> -> vector<4x16x1xf32>
    %86 = vector.broadcast %85 : vector<4x16x1xf32> to vector<4x16x16xf32>
    %87 = arith.mulf %82, %86 : vector<4x16x16xf32>
    %88 = arith.truncf %87 : vector<4x16x16xf32> to vector<4x16x16xbf16>
    "tpu.trace_start"() <{level = 10 : i32, message = "bnm,bmc->bnc"}> : () -> ()
    %cst_30 = arith.constant dense<0.000000e+00> : vector<4x16x8xf32>
    %89 = tpu.matmul %88, %70, %cst_30 {dimension_numbers = #tpu.dot_dimension_numbers<[2], [1], [1], [2], [0, 0, 0, 1, 1, 2], [0], [0]>} : vector<4x16x16xbf16>, vector<4x16x8xbf16>, vector<4x16x8xf32> -> vector<4x16x8xf32>
    "tpu.trace_stop"() : () -> ()
    %90 = vector.shape_cast %89 : vector<4x16x8xf32> to vector<64x8xf32>
    %91 = arith.truncf %90 : vector<64x8xf32> to vector<64x8xbf16>
    %c0_31 = arith.constant 0 : index
    %c16 = arith.constant 16 : index
    %92 = vector.load %arg8[%c0_31, %c16] : memref<64x32xbf16, #tpu.memory_space<vmem>>, vector<64x8xbf16>
    tpu.vector_store %arg8[%c0_31, %c16], %91 {strides = array<i32>} : memref<64x32xbf16, #tpu.memory_space<vmem>>, vector<64x8xbf16>,
    %93 = vector.extract_strided_slice %8 {offsets = [0, 24], sizes = [64, 8], strides = [1, 1]} : vector<64x96xbf16> to vector<64x8xbf16>
    %94 = vector.shape_cast %93 : vector<64x8xbf16> to vector<4x16x8xbf16>
    %95 = vector.extract_strided_slice %8 {offsets = [0, 56], sizes = [64, 8], strides = [1, 1]} : vector<64x96xbf16> to vector<64x8xbf16>
    %96 = vector.shape_cast %95 : vector<64x8xbf16> to vector<4x16x8xbf16>
    %97 = vector.extract_strided_slice %8 {offsets = [0, 88], sizes = [64, 8], strides = [1, 1]} : vector<64x96xbf16> to vector<64x8xbf16>
    %98 = vector.shape_cast %97 : vector<64x8xbf16> to vector<4x16x8xbf16>
    "tpu.trace_start"() <{level = 10 : i32, message = "bnc,bmc->bnm"}> : () -> ()
    %cst_32 = arith.constant dense<0.000000e+00> : vector<4x16x16xf32>
    %99 = tpu.matmul %94, %96, %cst_32 {dimension_numbers = #tpu.dot_dimension_numbers<[2], [2], [1], [1], [0, 0, 0, 1, 1, 1], [0], [0]>} : vector<4x16x8xbf16>, vector<4x16x8xbf16>, vector<4x16x16xf32> -> vector<4x16x16xf32>
    "tpu.trace_stop"() : () -> ()
    %100 = vector.shape_cast %99 : vector<4x16x16xf32> to vector<1x4x16x16xf32>
    %c3 = arith.constant 3 : index
    %c0_33 = arith.constant 0 : index
    %c0_34 = arith.constant 0 : index
    %c0_35 = arith.constant 0 : index
    %101 = vector.load %arg6[%c3, %c0_33, %c0_34, %c0_35] : memref<4x4x16x16xf32, #tpu.memory_space<vmem>>, vector<1x4x16x16xf32>
    %102 = vector.shape_cast %101 : vector<1x4x16x16xf32> to vector<4x16x16xf32>
    %103 = vector.shape_cast %102 : vector<4x16x16xf32> to vector<1x4x16x16xf32>
    %104 = arith.addf %100, %103 : vector<1x4x16x16xf32>
    %105 = vector.shape_cast %104 : vector<1x4x16x16xf32> to vector<4x16x16xf32>
    %cst_36 = arith.constant dense<0xFF800000> : vector<4x16xf32>
    %106 = vector.multi_reduction <maximumf>, %105, %cst_36 [2] : vector<4x16x16xf32> to vector<4x16xf32>
    %107 = vector.shape_cast %106 : vector<4x16xf32> to vector<4x16x1xf32>
    %108 = vector.broadcast %107 : vector<4x16x1xf32> to vector<4x16x16xf32>
    %109 = arith.subf %105, %108 : vector<4x16x16xf32>
    %110 = math.exp %109 : vector<4x16x16xf32>
    %cst_37 = arith.constant dense<0.000000e+00> : vector<4x16xf32>
    %111 = vector.multi_reduction <add>, %110, %cst_37 [2] : vector<4x16x16xf32> to vector<4x16xf32>
    %112 = vector.shape_cast %111 : vector<4x16xf32> to vector<4x16x1xf32>
    %113 = tpu.reciprocal %112 {approx = true} : vector<4x16x1xf32> -> vector<4x16x1xf32>
    %114 = vector.broadcast %113 : vector<4x16x1xf32> to vector<4x16x16xf32>
    %115 = arith.mulf %110, %114 : vector<4x16x16xf32>
    %116 = arith.truncf %115 : vector<4x16x16xf32> to vector<4x16x16xbf16>
    "tpu.trace_start"() <{level = 10 : i32, message = "bnm,bmc->bnc"}> : () -> ()
    %cst_38 = arith.constant dense<0.000000e+00> : vector<4x16x8xf32>
    %117 = tpu.matmul %116, %98, %cst_38 {dimension_numbers = #tpu.dot_dimension_numbers<[2], [1], [1], [2], [0, 0, 0, 1, 1, 2], [0], [0]>} : vector<4x16x16xbf16>, vector<4x16x8xbf16>, vector<4x16x8xf32> -> vector<4x16x8xf32>
    "tpu.trace_stop"() : () -> ()
    %118 = vector.shape_cast %117 : vector<4x16x8xf32> to vector<64x8xf32>
    %119 = arith.truncf %118 : vector<64x8xf32> to vector<64x8xbf16>
    %c0_39 = arith.constant 0 : index
    %c24 = arith.constant 24 : index
    %120 = vector.load %arg8[%c0_39, %c24] : memref<64x32xbf16, #tpu.memory_space<vmem>>, vector<64x8xbf16>
    tpu.vector_store %arg8[%c0_39, %c24], %119 {strides = array<i32>} : memref<64x32xbf16, #tpu.memory_space<vmem>>, vector<64x8xbf16>,
    %c0_40 = arith.constant 0 : index
    %c0_41 = arith.constant 0 : index
    %121 = vector.load %arg8[%c0_40, %c0_41] : memref<64x32xbf16, #tpu.memory_space<vmem>>, vector<64x32xbf16>
    %c0_42 = arith.constant 0 : index
    %c0_43 = arith.constant 0 : index
    %122 = vector.load %arg4[%c0_42, %c0_43] : memref<32x32xbf16, #tpu.memory_space<vmem>>, vector<32x32xbf16>
    %cst_44 = arith.constant dense<0.000000e+00> : vector<64x32xf32>
    %123 = tpu.matmul %121, %122, %cst_44 {dimension_numbers = #tpu.dot_dimension_numbers<[1], [0], [0], [1], [0, 0, 1, 1], [], []>} : vector<64x32xbf16>, vector<32x32xbf16>, vector<64x32xf32> -> vector<64x32xf32>
    %c0_45 = arith.constant 0 : index
    %c0_46 = arith.constant 0 : index
    %124 = vector.load %arg5[%c0_45, %c0_46] : memref<1x32xf32, #tpu.memory_space<vmem>>, vector<1x32xf32>
    %125 = vector.broadcast %124 : vector<1x32xf32> to vector<64x32xf32>
    %126 = arith.addf %123, %125 : vector<64x32xf32>
    %127 = vector.shape_cast %126 : vector<64x32xf32> to vector<4x16x32xf32>
    %c0_47 = arith.constant 0 : index
    %c0_48 = arith.constant 0 : index
    %c0_49 = arith.constant 0 : index
    %128 = vector.load %arg7[%c0_47, %c0_48, %c0_49] : memref<4x16x32xf32, #tpu.memory_space<vmem>>, vector<4x16x32xf32>
    tpu.vector_store %arg7[%c0_47, %c0_48, %c0_49], %127 {strides = array<i32>} : memref<4x16x32xf32, #tpu.memory_space<vmem>>, vector<4x16x32xf32>,
    return
  }
  func.func @transform_0(%arg0: i32) -> (i32, i32, i32) {
    %c0_i32 = arith.constant 0 : i32
    %c0_i32_0 = arith.constant 0 : i32
    %c0_i32_1 = arith.constant 0 : i32
    return %arg0, %c0_i32, %c0_i32_0 : i32, i32, i32
  }
  func.func @transform_1(%arg0: i32) -> (i32, i32) {
    %c0_i32 = arith.constant 0 : i32
    %c0_i32_0 = arith.constant 0 : i32
    %c0_i32_1 = arith.constant 0 : i32
    return %c0_i32, %c0_i32_0 : i32, i32
  }
  func.func @transform_2(%arg0: i32) -> (i32, i32) {
    %c0_i32 = arith.constant 0 : i32
    %c0_i32_0 = arith.constant 0 : i32
    %c0_i32_1 = arith.constant 0 : i32
    return %c0_i32, %c0_i32_0 : i32, i32
  }
  func.func @transform_3(%arg0: i32) -> (i32, i32) {
    %c0_i32 = arith.constant 0 : i32
    %c0_i32_0 = arith.constant 0 : i32
    %c0_i32_1 = arith.constant 0 : i32
    return %c0_i32, %c0_i32_0 : i32, i32
  }
  func.func @transform_4(%arg0: i32) -> (i32, i32) {
    %c0_i32 = arith.constant 0 : i32
    %c0_i32_0 = arith.constant 0 : i32
    %c0_i32_1 = arith.constant 0 : i32
    return %c0_i32, %c0_i32_0 : i32, i32
  }
  func.func @transform_5(%arg0: i32) -> (i32, i32, i32, i32) {
    %c0_i32 = arith.constant 0 : i32
    %c0_i32_0 = arith.constant 0 : i32
    %c0_i32_1 = arith.constant 0 : i32
    %c0_i32_2 = arith.constant 0 : i32
    %c0_i32_3 = arith.constant 0 : i32
    return %c0_i32, %c0_i32_0, %c0_i32_1, %c0_i32_2 : i32, i32, i32, i32
  }
  func.func @transform_6(%arg0: i32) -> (i32, i32, i32) {
    %c0_i32 = arith.constant 0 : i32
    %c0_i32_0 = arith.constant 0 : i32
    %c0_i32_1 = arith.constant 0 : i32
    return %arg0, %c0_i32, %c0_i32_0 : i32, i32, i32
  }
}

</mosaic_0001>

<bundles_post_ra>
// kernel: tpu_custom_call.1
= control target key start
LH: loop header
LB: loop body
LE: loop exit
PB: predicated region body
PF: predicated region fallthrough
CT: control target
= control target key end

     0   :  { %11 = vsyncpa [#allocation4], 0  ;;  %s4501_s0 = inlined_call_operand.hbm [shape: f32[8,16,32], index: 0, kind: input, shape index: {}]   ;;  %s4502_s1 = inlined_call_operand.hbm [shape: bf16[32,96], index: 1, kind: input, shape index: {}]   ;;  %s4503_s2 = inlined_call_operand.vmem [shape: f32[1,96], index: 2, kind: input, shape index: {}]   ;;  %s4504_s3 = inlined_call_operand.hbm [shape: bf16[32,32], index: 3, kind: input, shape index: {}]   ;;  %s4505_s4 = inlined_call_operand.vmem [shape: f32[1,32], index: 4, kind: input, shape index: {}]   ;;  %s4506_s5 = inlined_call_operand.hbm [shape: f32[4,4,16,16], index: 5, kind: input, shape index: {}]   ;;  %s4507_s6 = inlined_call_operand.hbm [shape: f32[8,16,32], index: 6, kind: output, shape index: {}]  }
   0x1   :  { %13 = vsyncpa [#allocation4 + $0x1], 0 }
   0x2   :  { %14 = vsyncpa [#allocation7], 0 }
   0x3   :  { %15 = vsyncpa [#allocation10], 0 }
   0x4   :  { %16 = vsyncpa [#allocation5], 0 }
   0x5   :  { %18 = vsyncpa [#allocation5 + $0x1], 0  ;;  %s3812_s21 = smov 0   ;;  %s3814_s22 = smov 0  }
   0x6   :  { %s3816_s23 = smov 0   ;;  %s3818_s24 = smov 0  }
   0x7 LB: > { %s3833_s25 = sadd.s32 4294967295, %s3749_s24   ;;  %s2901_s26 = sadd.s32 4294967294, %s3749_s24   ;;  %s3749_s24 = sphi %s3818_s24, %s4535_s24   ;;  %s3745_s23 = sphi %s3816_s23, %s4534_s23   ;;  %s3741_s22 = sphi %s3814_s22, %s4533_s22   ;;  %s3737_s21 = sphi %s3812_s21, %s4532_s21  }
   0x8   : > { %p44_p0 = scmp.ne.s32.totalorder %s3741_s22, %s3737_s21  ;;  %p4508_p1 = scmp.eq.s32.totalorder %s3833_s25, 0 }
   0x9   : > { %p179_p3 = scmp.eq.s32.totalorder %s2901_s26, 1  ;;  %p2902_p5 = scmp.ge.s32.totalorder %s3749_s24, 1 }
   0xa   : > { %p3842_p4 = por %p4508_p1, %p44_p0  ;;  %p186_p7 = scmp.lt.s32.totalorder %s3749_s24, 3 }
   0xb   : > { %p3847_p6 = por %p179_p3, %p44_p0  ;;  %s3751_s30 = smov [#allocation6]  }
   0xc   : > { %s4514_s27 = scalar_select %p3842_p4, 1, 0 }
   0xd   : > { %s4515_s28 = scalar_select %p3847_p6, 1, 0 }
   0xe   : > { %p3852_p8 = pnand %p2902_p5, %p186_p7  ;;  %s198_s7 = sshll.u32 %s3751_s30, 4  ;;  %s199_s7 = int_to_ptr.vmem [resolvable:$true] %s198_s7 }
   0xf   : > { %s3752_s9 = smov [#allocation8]   ;;  %s3753_s11 = smov [#allocation9]  }
  0x10   : > { %s4516_s29 = scalar_select %p3852_p8, 1, 0 }
  0x11   : > { %p3353_p9 = pneg %p3852_p8  ;;  %s214_s10 = sshll.u32 %s3752_s9, 4  ;;  %s215_s10 = int_to_ptr.vmem [resolvable:$true] %s214_s10 }
  0x12   : > { %s230_s12 = sshll.u32 %s3753_s11, 4  ;;  %s3582_s13 = scalar_lea.vmem %s199_s7, 256  ;;  %s231_s12 = int_to_ptr.vmem [resolvable:$true] %s230_s12 }
  0x13   : > { %p3861_p11 = pnand %p3353_p9, %p4508_p1  ;;  %p3583_p13 = scmp.ne.s32.totalorder %s199_s7, %s3582_s13 }
  0x14   : > { %p3590_p5 = scmp.lt.s32.totalorder %s199_s7, %s199_s7  ;;  %p3591_p7 = scmp.lt.s32.totalorder %s3582_s13, %s3582_s13 }
  0x15   : > { %p3573_p12 = pneg %p3861_p11 }
  0x16   : > { %p3592_p9 = por %p3591_p7, %p3590_p5 }
  0x17   : > { %p3585_p0 = pnand %p3583_p13, %p3573_p12 }
  0x19   : > { %p3586_p3 = pneg %p3585_p0 }
  0x1b   : > { %p3593_p10 = pnand %p3592_p9, %p3586_p3 }
  0x1d   : > { %3596 = shalt.err (!%p3593_p10)
}
  0x1e   : > { %s3754_s14 = smov 64   ;;  %s3755_s15 = smov 4  }
  0x1f   : > { %3356 = dma.hbm_to_vmem [thread:$0]  (!%p3861_p11), %s4502_s1, 256, %s199_s7, [#allocation7], %s3754_s14, %s3754_s14, %s3755_s15  }
  0x20   : > { %s3608_s18 = scalar_lea.vmem %s215_s10, 256  ;;  %p3616_p2 = scmp.lt.s32.totalorder %s215_s10, %s215_s10 }
  0x21   : > { %p3609_p1 = scmp.ne.s32.totalorder %s215_s10, %s3608_s18  ;;  %p3617_p6 = scmp.lt.s32.totalorder %s3608_s18, %s3608_s18 }
  0x23   : > { %p3611_p13 = pnand %p3609_p1, %p3573_p12  ;;  %p3618_p5 = por %p3617_p6, %p3616_p2 }
  0x25   : > { %p3612_p0 = pneg %p3611_p13 }
  0x27   : > { %p3619_p3 = pnand %p3618_p5, %p3612_p0 }
  0x29   : > { %3622 = shalt.err (!%p3619_p3)
}
  0x2a   : > { %3359 = dma.hbm_to_vmem [thread:$0]  (!%p3861_p11), %s4504_s3, 256, %s215_s10, [#allocation7], %s3754_s14, %s3754_s14, %s3755_s15  }
  0x2b   : > { %s3634_s26 = scalar_lea.vmem %s231_s12, 4096  ;;  %p3642_p9 = scmp.lt.s32.totalorder %s231_s12, %s231_s12 }
  0x2c   : > { %p3635_p10 = scmp.ne.s32.totalorder %s231_s12, %s3634_s26  ;;  %p3643_p13 = scmp.lt.s32.totalorder %s3634_s26, %s3634_s26 }
  0x2e   : > { %p3637_p7 = pnand %p3635_p10, %p3573_p12  ;;  %p3644_p4 = por %p3643_p13, %p3642_p9 }
  0x30   : > { %p3638_p1 = pneg %p3637_p7 }
  0x32   : > { %p3645_p2 = pnand %p3644_p4, %p3638_p1 }
  0x34   : > { %3648 = shalt.err (!%p3645_p2)
}
  0x35   : > { %s4510_s30 = smov 128   ;;  %s4511_s7 = smov 8  }
  0x36   : > { %3362 = dma.hbm_to_vmem [thread:$0]  (!%p3861_p11), %s4506_s5, 4096, %s231_s12, [#allocation10], %s4510_s30, %s4510_s30, %s4511_s7  }
  0x37   : > { %s3895_s11 = sadd.s32 1, %s3749_s24   ;;  %s31_s14 = sadd.s32 1, %s3745_s23 }
  0x38   : > { %s28_s13 = ssub.s32 %s3749_s24, %s3895_s11  ;;  %p38_p6 = scmp.ne.s32.totalorder %s3745_s23, %s3741_s22 }
  0x39   : > { %p29_p4 = scmp.eq.s32.totalorder %s28_s13, 0  ;;  %p39_p12 = scmp.eq.s32.totalorder %s3749_s24, 0 }
  0x3a   : > { %p3374_p0 = scmp.lt.s32.totalorder %s3749_s24, 2  ;;  %p4518_p3 = scmp.eq.s32.totalorder %s3833_s25, 1 }
  0x3b   : > { %s3905_s15 = scalar_select %p29_p4, %s3745_s23, %s31_s14  }
  0x3c   : > { %p40_p5 = por %p39_p12, %p38_p6  ;;  %p3909_p10 = por %p4518_p3, %p38_p6 }
  0x3d   : > { %s244_s16 = sand.u32 1, %s3745_s23   ;;  %s3006_s17 = sshll.u32 %s3749_s24, 10 }
  0x3e   : > { %s4519_s8 = scalar_select %p3909_p10, 1, 0 }
  0x3f   : > { %s2907_s12 = sshll.u32 %s244_s16, 6  ;;  %s3918_s20 = scalar_lea.hbm %s4501_s0, %s3006_s17 }
  0x40   : > { %s248_s26 = scalar_lea.vmem [#allocation3], %s2907_s12  ;;  %p3920_p11 = pnand %p3374_p0, %p40_p5 }
  0x41   : > { %s256_s9 = sshll.u32 %s248_s26, 4  ;;  %s3926_s13 = scalar_lea.sflag [#allocation4], %s244_s16  ;;  %s3924_s9 = int_to_ptr.vmem [resolvable:$true] %s256_s9 }
  0x42   : > { %s3649_s14 = scalar_lea.hbm %s3918_s20, 1024  ;;  %p3651_p1 = pneg %p3920_p11 }
  0x43   : > { %p3650_p7 = scmp.ne.s32.totalorder %s3918_s20, %s3649_s14  ;;  %s3654_s12 = scalar_lea.hbm %s4501_s0, 2048 }
  0x44   : > { %p3655_p2 = scmp.lt.s32.totalorder %s3918_s20, %s4501_s0  ;;  %p3656_p4 = scmp.lt.s32.totalorder %s3654_s12, %s3649_s14 }
  0x45   : > { %p3652_p9 = pnand %p3651_p1, %p3650_p7 }
  0x46   : > { %p3657_p6 = por %p3656_p4, %p3655_p2 }
  0x47   : > { %p3653_p13 = pneg %p3652_p9 }
  0x49   : > { %p3658_p12 = pnand %p3657_p6, %p3653_p13 }
  0x4b   : > { %3661 = shalt.err (!%p3658_p12)
}
  0x4c   : > { %s3662_s16 = scalar_lea.vmem %s3924_s9, 1024  ;;  %s3758_s30 = smov [#allocation3]  }
  0x4d   : > { %p3663_p0 = scmp.ne.s32.totalorder %s3924_s9, %s3662_s16  ;;  %s3667_s7 = sshll.u32 %s3758_s30, 4  ;;  %s3668_s7 = int_to_ptr.vmem [resolvable:$false] %s3667_s7 }
  0x4e   : > { %s3669_s17 = scalar_lea.vmem %s3668_s7, 2048  ;;  %p3670_p7 = scmp.lt.s32.totalorder %s3924_s9, %s3668_s7 }
  0x4f   : > { %p3665_p5 = pnand %p3663_p0, %p3651_p1  ;;  %p3671_p9 = scmp.lt.s32.totalorder %s3669_s17, %s3662_s16 }
  0x51   : > { %p3666_p3 = pneg %p3665_p5  ;;  %p3672_p10 = por %p3671_p9, %p3670_p7 }
  0x53   : > { %p3673_p8 = pnand %p3672_p10, %p3666_p3 }
  0x55   : > { %3676 = shalt.err (!%p3673_p8)
}
  0x56   : > { %s4521_s14 = smov 8   ;;  %s4522_s18 = smov 128  }
  0x57   : > { %3366 = dma.hbm_to_vmem [thread:$0]  (!%p3920_p11), %s3918_s20, 1024, %s3924_s9, %s3926_s13, %s4522_s18, %s4522_s18, %s4521_s14  }
  0x58   : > { %p4523_p1 = scmp.ne.s32.totalorder %s4516_s29, 0 }
  0x59   : > { %s3953_s30 = sand.u32 (!%p4523_p1), 1, %s3741_s22   ;;  %p4524_p8 = scmp.ne.s32.totalorder (!%p4523_p1), %s4514_s27, 0 }
  0x5a   : > { %268 = sbr.rel (%p4523_p1) target bundleno = 3146 (0xc4a), region = 44  ;;  %s2912_s7 = sshll.u32 (!%p4523_p1), %s3953_s30, 6 }
  0x5b   : > { %s271_s12 = scalar_lea.sflag (!%p4523_p1), [#allocation4], %s3953_s30  ;;  %s274_s10 = scalar_lea.vmem (!%p4523_p1), [#allocation3], %s2912_s7 }
  0x5f   : > { %3720 = dma.done.wait (%p4524_p8), %s271_s12, 1024  }
  0x60   : > { %3722 = vsyncadd (%p4524_p8), %s271_s12, 4294966272  ;;  %p4525_p10 = scmp.eq.s32.totalorder %s3833_s25, 0 }
  0x62   : > { %3724 = dma.done.wait (%p4525_p10), [#allocation7], 512   ;;  %p4526_p11 = pmov %p4525_p10 }
  0x63   : > { %p4527_p13 = pmov %p4525_p10 }
  0x64   : > { %3726 = vsyncadd (%p4526_p11), [#allocation7], 4294966784 }
  0x65   : > { %3728 = dma.done.wait (%p4527_p13), [#allocation10], 4096   ;;  %p4528_p2 = pmov %p4525_p10 }
  0x66   : > { %v3435_v0 = vld [vmem:[#allocation6 + $0x8] sm:$0xff]   ;;  %v3436_v1 = vld [vmem:[#allocation6] sm:$0xff]   ;;  %vm353_vm0 = vcmask 261120   ;;  %v320_v7 = vld [vmem:[%s274_s10 + $0x10] sm:$0xff]  ;;  %v3759_v14 = vmov 0.0   ;;  %vm3760_vm1 = vmmov 0  }
  0x67   : > { %3730 = vsyncadd (%p4528_p2), [#allocation10], 4294963200  ;;  %3117 = vmatprep.subr.bf16.mxu0 %v3435_v0  ;;  %3333 = vmatprep.subr.bf16.mxu1 %v3435_v0  ;;  %v318_v2 = vld [vmem:[%s274_s10] sm:$0xff]  ;;  %v319_v3 = vld [vmem:[%s274_s10 + $0x8] sm:$0xff]  ;;  %s3761_s20 = smov 96   ;;  %vm438_vm2 = vcmask 64512  }
  0x68   : > { %v322_v4 = vld [vmem:[%s274_s10 + $0x20] sm:$0xff]  ;;  %3118 = vmatpush3.bf16.msra.mxu0 %v3435_v0  ;;  %3335 = vmatpush3.bf16.msra.mxu1 %v3435_v0  ;;  %v326_v5 = vpack.c.bf16 %v319_v3, %v318_v2  ;;  %v323_v6 = vld [vmem:[%s274_s10 + $0x28] sm:$0xff]  ;;  %v321_v8 = vld [vmem:[%s274_s10 + $0x18] sm:$0xff]  ;;  %vm652_vm3 = vcmask 130048   ;;  %s3762_s9 = smov 64   ;;  %s3763_s13 = smov 88  }
  0x69   : > { %3119 = vmatprep.subr.bf16.mxu0 %v3436_v1  ;;  %3334 = vmatprep.subr.bf16.mxu1 %v3436_v1  ;;  %v328_v9 = vpack.c.bf16 %v323_v6, %v322_v4  ;;  %v324_v10 = vld [vmem:[%s274_s10 + $0x30] sm:$0xff]  ;;  %v325_v11 = vld [vmem:[%s274_s10 + $0x38] sm:$0xff]  ;;  %v327_v12 = vpack.c.bf16 %v321_v8, %v320_v7  ;;  %v2917_v19 = vld [vmem:[%s4503_s2] ss:$0 sm:$0xff]  ;;  %s3764_s19 = smov 120   ;;  %vm965_vm4 = vcmask 60416  }
  0x6a   : > { %3121 = vmatprep.mubr.msk.bf16.mxu0 %vm353_vm0, %v326_v5  ;;  %v329_v13 = vpack.c.bf16 %v325_v11, %v324_v10  ;;  %v636_v44 = vld [vmem:[#allocation9] sm:$0xff]  ;;  %v637_v52 = vld [vmem:[#allocation9 + $0x8] sm:$0xff]  ;;  %v638_v60 = vld [vmem:[#allocation9 + $0x10] sm:$0xff]  ;;  %s3765_s26 = smov 56   ;;  %s3766_s16 = smov 80   ;;  %vm1523_vm5 = vcmask 126016  }
  0x6b   : > { %3125 = vmatprep.mubr.msk.bf16.mxu1 %vm353_vm0, %v328_v9  ;;  %v640_v45 = vld [vmem:[#allocation9 + $0x20] sm:$0xff]  ;;  %v641_v3 = vld [vmem:[#allocation9 + $0x28] sm:$0xff]  ;;  %v642_v7 = vld [vmem:[#allocation9 + $0x30] sm:$0xff]  ;;  %s3767_s17 = smov 112   ;;  %s3768_s14 = smov 48   ;;  %vm2081_vm6 = vcmask 191616  }
  0x6c   : > { %3120 = vmatpush3.bf16.msra.mxu0 %v3436_v1  ;;  %3336 = vmatpush3.bf16.msra.mxu1 %v3436_v1  ;;  %v639_v1 = vld [vmem:[#allocation9 + $0x18] sm:$0xff]  ;;  %s3769_s18 = smov 72   ;;  %s3770_s12 = smov 104   ;;  %vm2639_vm7 = vcmask 257216  }
  0x6d   : > { %3129 = vmatprep.subr.bf16.mxu1 %v3759_v14  ;;  %3141 = vmatprep.subr.bf16.mxu0 %v3759_v14  ;;  %s3771_s10 = smov 40   ;;  %s3772_s27 = smov 8  }
  0x6e   : > { %s3773_s29 = smov 16   ;;  %p4529_p6 = scmp.ne.s32.totalorder %s4519_s8, 0 }
  0x6f   : > { %3122 = vmatmul.mubr.msk.bf16.vlgmr.msra.gmra.mxu0 %vm353_vm0, %v327_v12  ;;  %3126 = vmatmul.mubr.msk.bf16.vlgmr.msra.gmra.mxu1 %vm353_vm0, %v329_v13  ;;  %v643_v13 = vld [vmem:[#allocation9 + $0x38] sm:$0xff] }
  0x70   : > { %3131 = vmatprep.mubr.msk.bf16.mxu1 %vm3760_vm1, %v3759_v14  ;;  %3143 = vmatprep.mubr.msk.bf16.mxu0 %vm3760_vm1, %v3759_v14 }
 0x12f   : > { %v3123_v15 = vpop.f32.mrf.mxu0  ;;  %v3127_v16 = vpop.f32.mrf.mxu1 }
 0x130   : > { %v425_v28 = vadd.f32 %v3127_v16, %v2917_v19  ;;  %v409_v33 = vadd.f32 %v3123_v15, %v2917_v19 }
 0x131   : > { %v400_v17 = vpop.f32.mrf.mxu0  ;;  %v416_v18 = vpop.f32.mrf.mxu1 }
 0x132   : > { %v417_v22 = vadd.f32 %v2917_v19, %v416_v18  ;;  %v401_v25 = vadd.f32 %v2917_v19, %v400_v17 }
 0x133   : > { %v3124_v20 = vpop.f32.mrf.mxu0  ;;  %v3128_v21 = vpop.f32.mrf.mxu1 }
 0x134   : > { %v412_v29 = vadd.f32 %v3124_v20, %v2917_v19  ;;  %v428_v30 = vadd.f32 %v3128_v21, %v2917_v19 }
 0x135   : > { %v403_v23 = vpop.f32.mrf.mxu0  ;;  %v419_v24 = vpop.f32.mrf.mxu1 }
 0x136   : > { %v404_v26 = vadd.f32 %v2917_v19, %v403_v23  ;;  %v420_v27 = vadd.f32 %v2917_v19, %v419_v24  ;;  %v3990_v34 = vpack.c.bf16 %v412_v29, %v409_v33  ;;  %v3992_v35 = vpack.c.bf16 %v428_v30, %v425_v28 }
 0x138   : > { %v3984_v31 = vpack.c.bf16 %v404_v26, %v401_v25  ;;  %v3986_v32 = vpack.c.bf16 %v420_v27, %v417_v22 }
 0x13a   : > { %537 = vrot.lane.b32.xlu1 %v3986_v32, %s3761_s20  ;;  %436 = vrot.lane.b32.xlu0 %v3984_v31, %s3761_s20 }
 0x13e   : > { %587 = vrot.lane.b32.xlu1 %v3992_v35, %s3761_s20  ;;  %487 = vrot.lane.b32.xlu0 %v3990_v34, %s3761_s20  ;;  %s3774_s20 = smov 24  }
 0x1ac   : > { %v538_v36 = vpop.permute.xlu1 %537  ;;  %v437_v37 = vpop.permute.xlu0 %436 }
 0x1ad   : > { %v543_v38 = vsel %vm438_vm2, %v538_v36, 0  ;;  %v443_v39 = vsel %vm438_vm2, %v437_v37, 0 }
 0x1ae   : > { %3130 = vmatpush3.bf16.xpose.msra.mxu1 %v443_v39  ;;  %3142 = vmatpush3.bf16.xpose.msra.mxu0 %v543_v38 }
 0x1af   : > { %3135 = vmatprep.subr.bf16.mxu1 %v3759_v14  ;;  %3153 = vmatprep.subr.bf16.mxu0 %v3759_v14 }
 0x1b0   : > { %v488_v40 = vpop.permute.xlu0 %487  ;;  %v588_v42 = vpop.permute.xlu1 %587 }
 0x1b1   : > { %v493_v41 = vsel %vm438_vm2, %v488_v40, 0  ;;  %v593_v43 = vsel %vm438_vm2, %v588_v42, 0 }
 0x1b5   : > { %3132 = vmatmul.mubr.msk.bf16.vlgmr.msra.gmra.mxu1 %vm438_vm2, %v3984_v31  ;;  %3144 = vmatmul.mubr.msk.bf16.vlgmr.msra.gmra.mxu0 %vm438_vm2, %v3986_v32 }
 0x1b6   : > { %3136 = vmatpush3.bf16.xpose.msra.mxu1 %v493_v41  ;;  %3137 = vmatprep.mubr.msk.bf16.mxu1 %vm3760_vm1, %v3759_v14 }
 0x1b7   : > { %3147 = vmatprep.subr.bf16.mxu1 %v3759_v14  ;;  %3155 = vmatprep.mubr.msk.bf16.mxu0 %vm3760_vm1, %v3759_v14 }
 0x1bd   : > { %3138 = vmatmul.mubr.msk.bf16.vlgmr.msra.gmra.mxu1 %vm438_vm2, %v3990_v34 }
 0x1be   : > { %3148 = vmatpush3.bf16.xpose.msra.mxu1 %v593_v43  ;;  %3149 = vmatprep.mubr.msk.bf16.mxu1 %vm3760_vm1, %v3759_v14 }
 0x1bf   : > { %3159 = vmatprep.subr.bf16.mxu1 %v3759_v14 }
 0x1c5   : > { %3150 = vmatmul.mubr.msk.bf16.vlgmr.msra.gmra.mxu1 %vm438_vm2, %v3992_v35 }
 0x1c6   : > { %3161 = vmatprep.mubr.msk.bf16.mxu1 %vm3760_vm1, %v3759_v14 }
 0x275   : > { %v479_v46 = vpop.f32.mrf.mxu1  ;;  %v579_v47 = vpop.f32.mrf.mxu0 }
 0x276   : > { %v644_v48 = vadd.f32 %v636_v44, %v479_v46  ;;  %v648_v49 = vadd.f32 %v640_v45, %v579_v47 }
 0x277   : > { %v3133_v50 = vpop.f32.mrf.mxu1  ;;  %v3145_v51 = vpop.f32.mrf.mxu0 }
 0x278   : > { %v665_v53 = vsel %vm652_vm3, %v648_v49, -inf  ;;  %v653_v54 = vsel %vm652_vm3, %v644_v48, -inf }
 0x279   : > { %666 = vmax.xlane.f32.xlu1 %v665_v53  ;;  %v582_v55 = vpop.f32.mrf.mxu0  ;;  %654 = vmax.xlane.f32.xlu0 %v653_v54  ;;  %v482_v56 = vpop.f32.mrf.mxu1 }
 0x27a   : > { %v645_v57 = vadd.f32 %v637_v52, %v482_v56  ;;  %v649_v8 = vadd.f32 %v641_v3, %v582_v55 }
 0x27b   : > { %v3134_v58 = vpop.f32.mrf.mxu1  ;;  %v3146_v59 = vpop.f32.mrf.mxu0 }
 0x27c   : > { %v656_v61 = vsel %vm652_vm3, %v645_v57, -inf  ;;  %v668_v15 = vsel %vm652_vm3, %v649_v8, -inf }
 0x27d   : > { %657 = vmax.xlane.f32.xlu1 %v656_v61  ;;  %v529_v62 = vpop.f32.mrf.mxu1 }
 0x27e   : > { %v646_v63 = vadd.f32 %v638_v60, %v529_v62 }
 0x27f   : > { %v3139_v0 = vpop.f32.mrf.mxu1 }
 0x280   : > { %v659_v2 = vsel %vm652_vm3, %v646_v63, -inf }
 0x281   : > { %660 = vmax.xlane.f32.xlu0 %v659_v2  ;;  %v532_v4 = vpop.f32.mrf.mxu1 }
 0x282   : > { %v647_v5 = vadd.f32 %v639_v1, %v532_v4 }
 0x283   : > { %v3140_v6 = vpop.f32.mrf.mxu1 }
 0x284   : > { %v662_v9 = vsel %vm652_vm3, %v647_v5, -inf }
 0x285   : > { %663 = vmax.xlane.f32.xlu0 %v662_v9  ;;  %v629_v10 = vpop.f32.mrf.mxu1 }
 0x286   : > { %v4025_v11 = vadd.f32 %v642_v7, %v629_v10 }
 0x287   : > { %v3151_v12 = vpop.f32.mrf.mxu1 }
 0x288   : > { %v671_v16 = vsel %vm652_vm3, %v4025_v11, -inf }
 0x289   : > { %669 = vmax.xlane.f32.xlu0 %v668_v15  ;;  %672 = vmax.xlane.f32.xlu1 %v671_v16  ;;  %v632_v17 = vpop.f32.mrf.mxu1 }
 0x28a   : > { %v651_v18 = vadd.f32 %v643_v13, %v632_v17 }
 0x28b   : > { %v3152_v19 = vpop.f32.mrf.mxu1 }
 0x28c   : > { %v674_v20 = vsel %vm652_vm3, %v651_v18, -inf }
 0x28d   : > { %675 = vmax.xlane.f32.xlu0 %v674_v20 }
 0x29a   : > { %745 = vrot.lane.b32.xlu1 %v3984_v31, %s3762_s9 }
 0x302   : > { %v667_v21 = vpop.xlane.xlu1 %666  ;;  %v655_v22 = vpop.xlane.xlu0 %654 }
 0x303   : > { %v681_v23 = vsub.f32 %v648_v49, %v667_v21  ;;  %v677_v24 = vsub.f32 %v644_v48, %v655_v22 }
 0x305   : > { %v685_v25 = vmul.f32 1.442695, %v677_v24  ;;  %v693_v26 = vmul.f32 1.442695, %v681_v23 }
 0x306   : > { %v658_v27 = vpop.xlane.xlu1 %657 }
 0x307   : > { %v678_v28 = vsub.f32 %v645_v57, %v658_v27  ;;  %3443 = vpow2.f32 %v685_v25 }
 0x308   : > { %3445 = vpow2.f32 %v693_v26 }
 0x309   : > { %v687_v29 = vmul.f32 1.442695, %v678_v28 }
 0x30a   : > { %v661_v30 = vpop.xlane.xlu0 %660 }
 0x30b   : > { %3447 = vpow2.f32 %v687_v29  ;;  %v679_v33 = vsub.f32 %v646_v63, %v661_v30 }
 0x30d   : > { %v689_v36 = vmul.f32 1.442695, %v679_v33 }
 0x30e   : > { %v664_v37 = vpop.xlane.xlu0 %663 }
 0x30f   : > { %3449 = vpow2.f32 %v689_v36  ;;  %v680_v38 = vsub.f32 %v647_v5, %v664_v37 }
 0x311   : > { %v691_v44 = vmul.f32 1.442695, %v680_v38 }
 0x312   : > { %v673_v39 = vpop.xlane.xlu1 %672  ;;  %v670_v40 = vpop.xlane.xlu0 %669 }
 0x313   : > { %v682_v41 = vsub.f32 %v649_v8, %v670_v40  ;;  %v683_v57 = vsub.f32 %v4025_v11, %v673_v39 }
 0x314   : > { %v3444_v42 = vpop.eup %3443 }
 0x315   : > { %v695_v43 = vmul.f32 1.442695, %v682_v41  ;;  %v701_v46 = vsel %vm652_vm3, %v3444_v42, 0.0  ;;  %v4034_v47 = vpop.eup %3445  ;;  %v697_v58 = vmul.f32 1.442695, %v683_v57 }
 0x316   : > { %v746_v45 = vpop.permute.xlu1 %745  ;;  %702 = vadd.xlane.f32.xlu1 %v701_v46  ;;  %v713_v50 = vsel %vm652_vm3, %v4034_v47, 0.0  ;;  %v676_v59 = vpop.xlane.xlu0 %675 }
 0x317   : > { %3154 = vmatpush3.bf16.msra.mxu0 %v746_v45  ;;  %3451 = vpow2.f32 %v695_v43  ;;  %v684_v60 = vsub.f32 %v651_v18, %v676_v59 }
 0x318   : > { %v3448_v48 = vpop.eup %3447  ;;  %3165 = vmatprep.subr.bf16.mxu0 %v3759_v14  ;;  %3453 = vpow2.f32 %v691_v44 }
 0x319   : > { %v704_v49 = vsel %vm652_vm3, %v3448_v48, 0.0  ;;  %3455 = vpow2.f32 %v697_v58  ;;  %v699_v61 = vmul.f32 1.442695, %v684_v60 }
 0x31a   : > { %705 = vadd.xlane.f32.xlu0 %v704_v49  ;;  %714 = vadd.xlane.f32.xlu1 %v713_v50 }
 0x31b   : > { %3457 = vpow2.f32 %v699_v61 }
 0x31c   : > { %v4040_v51 = vpop.eup %3449 }
 0x31d   : > { %v707_v52 = vsel %vm652_vm3, %v4040_v51, 0.0 }
 0x31e   : > { %708 = vadd.xlane.f32.xlu1 %v707_v52 }
 0x324   : > { %v3452_v53 = vpop.eup %3451 }
 0x325   : > { %v716_v54 = vsel %vm652_vm3, %v3452_v53, 0.0  ;;  %v4045_v55 = vpop.eup %3453 }
 0x326   : > { %717 = vadd.xlane.f32.xlu0 %v716_v54  ;;  %v710_v56 = vsel %vm652_vm3, %v4045_v55, 0.0  ;;  %v4056_v62 = vpop.eup %3455 }
 0x327   : > { %v719_v63 = vsel %vm652_vm3, %v4056_v62, 0.0 }
 0x328   : > { %v4060_v0 = vpop.eup %3457 }
 0x329   : > { %v722_v1 = vsel %vm652_vm3, %v4060_v0, 0.0 }
 0x32a   : > { %711 = vadd.xlane.f32.xlu0 %v710_v56 }
 0x32f   : > { %839 = vrot.lane.b32.xlu1 %v3986_v32, %s3762_s9 }
 0x333   : > { %886 = vrot.lane.b32.xlu1 %v3992_v35, %s3762_s9 }
 0x340   : > { %792 = vrot.lane.b32.xlu0 %v3990_v34, %s3762_s9 }
 0x357   : > { %720 = vadd.xlane.f32.xlu1 %v719_v63 }
 0x35f   : > { %723 = vadd.xlane.f32.xlu0 %v722_v1 }
 0x368   : > { %1027 = vrot.lane.b32.xlu1 %v3990_v34, %s3763_s13 }
 0x36c   : > { %1078 = vrot.lane.b32.xlu1 %v3986_v32, %s3763_s13 }
 0x370   : > { %1129 = vrot.lane.b32.xlu1 %v3992_v35, %s3763_s13 }
 0x374   : > { %1127 = vrot.lane.b32.xlu1 %v3992_v35, %s3764_s19 }
 0x375   : > { %976 = vrot.lane.b32.xlu0 %v3984_v31, %s3763_s13 }
 0x379   : > { %974 = vrot.lane.b32.xlu0 %v3984_v31, %s3764_s19 }
 0x37d   : > { %1025 = vrot.lane.b32.xlu0 %v3990_v34, %s3764_s19 }
 0x381   : > { %1076 = vrot.lane.b32.xlu0 %v3986_v32, %s3764_s19  ;;  %s314_s19 = scalar_lea.vmem [#allocation11], %s2912_s7  ;;  %s3040_s7 = sshll.u32 %s3833_s25, 10 }
 0x382   : > { %s2785_s25 = scalar_lea.sflag [#allocation5], %s3953_s30 }
 0x39f   : > { %v703_v2 = vpop.xlane.xlu1 %702 }
 0x3a0   : > { %3459 = vrcp.f32 %v703_v2 }
 0x3a3   : > { %v706_v3 = vpop.xlane.xlu0 %705  ;;  %v715_v4 = vpop.xlane.xlu1 %714 }
 0x3a4   : > { %3461 = vrcp.f32 %v706_v3 }
 0x3a5   : > { %3463 = vrcp.f32 %v715_v4  ;;  %v1179_v4 = vld [vmem:[#allocation9 + $0x40] sm:$0xff] }
 0x3a7   : > { %v709_v6 = vpop.xlane.xlu1 %708 }
 0x3ab   : > { %v840_v13 = vpop.permute.xlu1 %839 }
 0x3ad   : > { %v3460_v5 = vpop.eup %3459 }
 0x3ae   : > { %v733_v9 = vmul.f32 %v3460_v5, %v3444_v42 }
 0x3af   : > { %v718_v7 = vpop.xlane.xlu0 %717  ;;  %v887_v26 = vpop.permute.xlu1 %886 }
 0x3b0   : > { %3465 = vrcp.f32 %v718_v7 }
 0x3b1   : > { %v3462_v8 = vpop.eup %3461  ;;  %3467 = vrcp.f32 %v709_v6 }
 0x3b2   : > { %v734_v10 = vmul.f32 %v3462_v8, %v3448_v48  ;;  %v3464_v16 = vpop.eup %3463  ;;  %v1180_v8 = vld [vmem:[#allocation9 + $0x48] sm:$0xff] }
 0x3b3   : > { %v712_v11 = vpop.xlane.xlu0 %711  ;;  %v737_v18 = vmul.f32 %v3464_v16, %v4034_v47 }
 0x3b4   : > { %v741_v12 = vpack.c.bf16 %v734_v10, %v733_v9  ;;  %3469 = vrcp.f32 %v712_v11 }
 0x3b6   : > { %3156 = vmatmul.mubr.msk.bf16.vlgmr.msra.gmra.mxu0 %vm652_vm3, %v741_v12 }
 0x3b7   : > { %3166 = vmatpush3.bf16.msra.mxu0 %v840_v13  ;;  %3167 = vmatprep.mubr.msk.bf16.mxu0 %vm3760_vm1, %v3759_v14  ;;  %v793_v15 = vpop.permute.xlu0 %792 }
 0x3b8   : > { %3177 = vmatprep.subr.bf16.mxu0 %v3759_v14  ;;  %3160 = vmatpush3.bf16.msra.mxu1 %v793_v15  ;;  %v1183_v15 = vld [vmem:[#allocation9 + $0x60] sm:$0xff] }
 0x3b9   : > { %3171 = vmatprep.subr.bf16.mxu1 %v3759_v14 }
 0x3bd   : > { %v3466_v17 = vpop.eup %3465 }
 0x3be   : > { %v738_v19 = vmul.f32 %v3466_v17, %v3452_v53  ;;  %v3468_v20 = vpop.eup %3467 }
 0x3bf   : > { %v735_v23 = vmul.f32 %v3468_v20, %v4040_v51 }
 0x3c0   : > { %v743_v21 = vpack.c.bf16 %v738_v19, %v737_v18 }
 0x3c1   : > { %v3470_v22 = vpop.eup %3469 }
 0x3c2   : > { %3168 = vmatmul.mubr.msk.bf16.vlgmr.msra.gmra.mxu0 %vm652_vm3, %v743_v21  ;;  %v736_v24 = vmul.f32 %v3470_v22, %v4045_v55 }
 0x3c3   : > { %3179 = vmatprep.mubr.msk.bf16.mxu0 %vm3760_vm1, %v3759_v14 }
 0x3c4   : > { %v742_v25 = vpack.c.bf16 %v736_v24, %v735_v23 }
 0x3c6   : > { %3162 = vmatmul.mubr.msk.bf16.vlgmr.msra.gmra.mxu1 %vm652_vm3, %v742_v25 }
 0x3c7   : > { %3172 = vmatpush3.bf16.msra.mxu1 %v887_v26  ;;  %3173 = vmatprep.mubr.msk.bf16.mxu1 %vm3760_vm1, %v3759_v14 }
 0x3c8   : > { %3183 = vmatprep.subr.bf16.mxu1 %v3759_v14 }
 0x3e0   : > { %v721_v27 = vpop.xlane.xlu1 %720 }
 0x3e1   : > { %3471 = vrcp.f32 %v721_v27  ;;  %v1181_v27 = vld [vmem:[#allocation9 + $0x50] sm:$0xff] }
 0x3e4   : > { %v1028_v29 = vpop.permute.xlu1 %1027 }
 0x3e5   : > { %v1033_v45 = vsel %vm438_vm2, %v1028_v29, 0 }
 0x3e8   : > { %v724_v28 = vpop.xlane.xlu0 %723  ;;  %v1079_v37 = vpop.permute.xlu1 %1078 }
 0x3e9   : > { %3473 = vrcp.f32 %v724_v28  ;;  %v1084_v39 = vsel %vm438_vm2, %v1079_v37, 0 }
 0x3ec   : > { %v977_v30 = vpop.permute.xlu0 %976  ;;  %v1130_v47 = vpop.permute.xlu1 %1129 }
 0x3ed   : > { %v982_v33 = vsel %vm438_vm2, %v977_v30, 0  ;;  %v1135_v48 = vsel %vm438_vm2, %v1130_v47, 0 }
 0x3ee   : > { %3178 = vmatpush3.bf16.xpose.msra.mxu0 %v982_v33  ;;  %v3472_v38 = vpop.eup %3471 }
 0x3ef   : > { %3189 = vmatprep.subr.bf16.mxu0 %v3759_v14  ;;  %v739_v42 = vmul.f32 %v3472_v38, %v4056_v62  ;;  %v1184_v38 = vld [vmem:[#allocation9 + $0x68] sm:$0xff] }
 0x3f0   : > { %v975_v36 = vpop.permute.xlu0 %974  ;;  %v1128_v49 = vpop.permute.xlu1 %1127 }
 0x3f4   : > { %v1026_v41 = vpop.permute.xlu0 %1025 }
 0x3f5   : > { %3180 = vmatmul.mubr.msk.bf16.vlgmr.msra.gmra.mxu0 %vm438_vm2, %v975_v36  ;;  %v1182_v36 = vld [vmem:[#allocation9 + $0x58] sm:$0xff] }
 0x3f6   : > { %v3474_v40 = vpop.eup %3473  ;;  %3190 = vmatpush3.bf16.xpose.msra.mxu0 %v1084_v39  ;;  %3191 = vmatprep.mubr.msk.bf16.mxu0 %vm3760_vm1, %v3759_v14 }
 0x3f7   : > { %v740_v43 = vmul.f32 %v3474_v40, %v4060_v0  ;;  %3201 = vmatprep.subr.bf16.mxu0 %v3759_v14 }
 0x3f8   : > { %v1077_v46 = vpop.permute.xlu0 %1076 }
 0x3f9   : > { %v744_v44 = vpack.c.bf16 %v740_v43, %v739_v42  ;;  %v1185_v42 = vld [vmem:[#allocation9 + $0x70] sm:$0xff] }
 0x3fb   : > { %3174 = vmatmul.mubr.msk.bf16.vlgmr.msra.gmra.mxu1 %vm652_vm3, %v744_v44 }
 0x3fc   : > { %3184 = vmatpush3.bf16.xpose.msra.mxu1 %v1033_v45  ;;  %3185 = vmatprep.mubr.msk.bf16.mxu1 %vm3760_vm1, %v3759_v14 }
 0x3fd   : > { %3192 = vmatmul.mubr.msk.bf16.vlgmr.msra.gmra.mxu0 %vm438_vm2, %v1077_v46  ;;  %3195 = vmatprep.subr.bf16.mxu1 %v3759_v14 }
 0x3fe   : > { %3203 = vmatprep.mubr.msk.bf16.mxu0 %vm3760_vm1, %v3759_v14 }
 0x403   : > { %3186 = vmatmul.mubr.msk.bf16.vlgmr.msra.gmra.mxu1 %vm438_vm2, %v1026_v41 }
 0x404   : > { %3196 = vmatpush3.bf16.xpose.msra.mxu1 %v1135_v48  ;;  %3197 = vmatprep.mubr.msk.bf16.mxu1 %vm3760_vm1, %v3759_v14  ;;  %v1186_v48 = vld [vmem:[#allocation9 + $0x78] sm:$0xff] }
 0x405   : > { %3207 = vmatprep.subr.bf16.mxu1 %v3759_v14 }
 0x40b   : > { %3198 = vmatmul.mubr.msk.bf16.vlgmr.msra.gmra.mxu1 %vm438_vm2, %v1128_v49 }
 0x40c   : > { %3209 = vmatprep.mubr.msk.bf16.mxu1 %vm3760_vm1, %v3759_v14 }
 0x476   : > { %v785_v50 = vpop.f32.mrf.mxu0 }
 0x477   : > { %v3007_v51 = vpack.c.bf16 %v785_v50, %v785_v50 }
 0x478   : > { %v3157_v52 = vpop.f32.mrf.mxu0 }
 0x479   : > { %966 = vst.msk [vmem:[#allocation2] sm:$0xf] %vm965_vm4, %v3007_v51 }
 0x47a   : > { %v788_v53 = vpop.f32.mrf.mxu0 }
 0x47b   : > { %v3008_v54 = vpack.c.bf16 %v788_v53, %v788_v53 }
 0x47c   : > { %v3158_v55 = vpop.f32.mrf.mxu0 }
 0x47d   : > { %967 = vst.msk [vmem:[#allocation2 + $0x4] sm:$0xf] %vm965_vm4, %v3008_v54 }
 0x482   : > { %v879_v56 = vpop.f32.mrf.mxu0 }
 0x483   : > { %v3011_v57 = vpack.c.bf16 %v879_v56, %v879_v56 }
 0x484   : > { %v3169_v58 = vpop.f32.mrf.mxu0 }
 0x485   : > { %970 = vst.msk [vmem:[#allocation2 + $0x10] sm:$0xf] %vm965_vm4, %v3011_v57 }
 0x486   : > { %v832_v59 = vpop.f32.mrf.mxu1  ;;  %v882_v60 = vpop.f32.mrf.mxu0 }
 0x487   : > { %v3009_v61 = vpack.c.bf16 %v832_v59, %v832_v59  ;;  %v3012_v62 = vpack.c.bf16 %v882_v60, %v882_v60 }
 0x488   : > { %v3163_v63 = vpop.f32.mrf.mxu1  ;;  %v3170_v0 = vpop.f32.mrf.mxu0 }
 0x489   : > { %968 = vst.msk [vmem:[#allocation2 + $0x8] sm:$0xf] %vm965_vm4, %v3009_v61  ;;  %971 = vst.msk [vmem:[#allocation2 + $0x14] sm:$0xf] %vm965_vm4, %v3012_v62 }
 0x48a   : > { %v835_v1 = vpop.f32.mrf.mxu1 }
 0x48b   : > { %v3010_v2 = vpack.c.bf16 %v835_v1, %v835_v1 }
 0x48c   : > { %v3164_v3 = vpop.f32.mrf.mxu1 }
 0x48d   : > { %969 = vst.msk [vmem:[#allocation2 + $0xc] sm:$0xf] %vm965_vm4, %v3010_v2 }
 0x4b5   : > { %v1018_v5 = vpop.f32.mrf.mxu0 }
 0x4b6   : > { %v1187_v6 = vadd.f32 %v1179_v4, %v1018_v5 }
 0x4b7   : > { %v3181_v7 = vpop.f32.mrf.mxu0 }
 0x4b8   : > { %v1195_v9 = vsel %vm652_vm3, %v1187_v6, -inf }
 0x4b9   : > { %1196 = vmax.xlane.f32.xlu0 %v1195_v9  ;;  %v1021_v10 = vpop.f32.mrf.mxu0 }
 0x4ba   : > { %v1188_v11 = vadd.f32 %v1180_v8, %v1021_v10 }
 0x4bb   : > { %v926_v12 = vpop.f32.mrf.mxu1  ;;  %v3182_v13 = vpop.f32.mrf.mxu0 }
 0x4bc   : > { %v3013_v16 = vpack.c.bf16 %v926_v12, %v926_v12  ;;  %v1198_v17 = vsel %vm652_vm3, %v1188_v11, -inf }
 0x4bd   : > { %v3175_v18 = vpop.f32.mrf.mxu1  ;;  %1199 = vmax.xlane.f32.xlu1 %v1198_v17  ;;  %v1120_v19 = vpop.f32.mrf.mxu0 }
 0x4be   : > { %972 = vst.msk [vmem:[#allocation2 + $0x18] sm:$0xf] %vm965_vm4, %v3013_v16  ;;  %v1191_v20 = vadd.f32 %v1183_v15, %v1120_v19 }
 0x4bf   : > { %v929_v21 = vpop.f32.mrf.mxu1  ;;  %v3193_v22 = vpop.f32.mrf.mxu0 }
 0x4c0   : > { %v3014_v23 = vpack.c.bf16 %v929_v21, %v929_v21  ;;  %v1207_v24 = vsel %vm652_vm3, %v1191_v20, -inf }
 0x4c1   : > { %v3176_v25 = vpop.f32.mrf.mxu1  ;;  %1208 = vmax.xlane.f32.xlu1 %v1207_v24  ;;  %v1123_v26 = vpop.f32.mrf.mxu0 }
 0x4c2   : > { %973 = vst.msk [vmem:[#allocation2 + $0x1c] sm:$0xf] %vm965_vm4, %v3014_v23  ;;  %v1192_v43 = vadd.f32 %v1184_v38, %v1123_v26 }
 0x4c3   : > { %v1069_v28 = vpop.f32.mrf.mxu1  ;;  %v3194_v29 = vpop.f32.mrf.mxu0 }
 0x4c4   : > { %v1189_v30 = vadd.f32 %v1181_v27, %v1069_v28  ;;  %v1210_v50 = vsel %vm652_vm3, %v1192_v43, -inf }
 0x4c5   : > { %v3187_v33 = vpop.f32.mrf.mxu1 }
 0x4c6   : > { %v1201_v37 = vsel %vm652_vm3, %v1189_v30, -inf }
 0x4c7   : > { %1202 = vmax.xlane.f32.xlu0 %v1201_v37  ;;  %v1072_v39 = vpop.f32.mrf.mxu1 }
 0x4c8   : > { %v1190_v40 = vadd.f32 %v1182_v36, %v1072_v39 }
 0x4c9   : > { %v3188_v41 = vpop.f32.mrf.mxu1 }
 0x4ca   : > { %v1204_v44 = vsel %vm652_vm3, %v1190_v40, -inf }
 0x4cb   : > { %1205 = vmax.xlane.f32.xlu0 %v1204_v44  ;;  %v1171_v45 = vpop.f32.mrf.mxu1 }
 0x4cc   : > { %v1193_v46 = vadd.f32 %v1185_v42, %v1171_v45 }
 0x4cd   : > { %v3199_v47 = vpop.f32.mrf.mxu1 }
 0x4ce   : > { %v1213_v49 = vsel %vm652_vm3, %v1193_v46, -inf }
 0x4cf   : > { %v1174_v51 = vpop.f32.mrf.mxu1  ;;  %1214 = vmax.xlane.f32.xlu1 %v1213_v49  ;;  %1211 = vmax.xlane.f32.xlu0 %v1210_v50 }
 0x4d0   : > { %v1194_v52 = vadd.f32 %v1186_v48, %v1174_v51 }
 0x4d1   : > { %v3200_v53 = vpop.f32.mrf.mxu1 }
 0x4d2   : > { %v1216_v54 = vsel %vm652_vm3, %v1194_v52, -inf }
 0x4d3   : > { %1217 = vmax.xlane.f32.xlu0 %v1216_v54 }
 0x4e0   : > { %1287 = vrot.lane.b32.xlu1 %v3984_v31, %s3765_s26 }
 0x4e4   : > { %1381 = vrot.lane.b32.xlu1 %v3986_v32, %s3765_s26 }
 0x4e8   : > { %1428 = vrot.lane.b32.xlu1 %v3992_v35, %s3765_s26 }
 0x4e9   : > { %1334 = vrot.lane.b32.xlu0 %v3990_v34, %s3765_s26  ;;  %s2799_s26 = sshll.u32 %s314_s19, 4  ;;  %s4456_s26 = int_to_ptr.vmem [resolvable:$true] %s2799_s26 }
 0x542   : > { %v1197_v55 = vpop.xlane.xlu0 %1196 }
 0x543   : > { %v1219_v56 = vsub.f32 %v1187_v6, %v1197_v55 }
 0x545   : > { %v1227_v57 = vmul.f32 1.442695, %v1219_v56 }
 0x546   : > { %v1200_v58 = vpop.xlane.xlu1 %1199 }
 0x547   : > { %3475 = vpow2.f32 %v1227_v57  ;;  %v1220_v59 = vsub.f32 %v1188_v11, %v1200_v58 }
 0x549   : > { %v1229_v60 = vmul.f32 1.442695, %v1220_v59 }
 0x54a   : > { %v1209_v61 = vpop.xlane.xlu1 %1208 }
 0x54b   : > { %3477 = vpow2.f32 %v1229_v60  ;;  %v1223_v62 = vsub.f32 %v1191_v20, %v1209_v61 }
 0x54d   : > { %v1235_v1 = vmul.f32 1.442695, %v1223_v62 }
 0x550   : > { %v1203_v63 = vpop.xlane.xlu0 %1202 }
 0x551   : > { %v1221_v0 = vsub.f32 %v1189_v30, %v1203_v63 }
 0x553   : > { %v1231_v2 = vmul.f32 1.442695, %v1221_v0 }
 0x554   : > { %v4132_v3 = vpop.eup %3475  ;;  %v1206_v4 = vpop.xlane.xlu0 %1205 }
 0x555   : > { %3479 = vpow2.f32 %v1231_v2  ;;  %v1222_v5 = vsub.f32 %v1190_v40, %v1206_v4  ;;  %v1243_v6 = vsel %vm652_vm3, %v4132_v3, 0.0 }
 0x556   : > { %1244 = vadd.xlane.f32.xlu1 %v1243_v6  ;;  %3481 = vpow2.f32 %v1235_v1 }
 0x557   : > { %v1233_v7 = vmul.f32 1.442695, %v1222_v5 }
 0x558   : > { %v4136_v8 = vpop.eup %3477  ;;  %v1215_v9 = vpop.xlane.xlu1 %1214 }
 0x559   : > { %v1212_v10 = vpop.xlane.xlu0 %1211  ;;  %3483 = vpow2.f32 %v1233_v7  ;;  %v1225_v11 = vsub.f32 %v1193_v46, %v1215_v9  ;;  %v1246_v13 = vsel %vm652_vm3, %v4136_v8, 0.0 }
 0x55a   : > { %v1224_v12 = vsub.f32 %v1192_v43, %v1212_v10  ;;  %1247 = vadd.xlane.f32.xlu0 %v1246_v13 }
 0x55b   : > { %v1239_v15 = vmul.f32 1.442695, %v1225_v11 }
 0x55c   : > { %v1237_v16 = vmul.f32 1.442695, %v1224_v12  ;;  %v1288_v17 = vpop.permute.xlu1 %1287 }
 0x55d   : > { %v1218_v18 = vpop.xlane.xlu0 %1217  ;;  %3485 = vpow2.f32 %v1239_v15  ;;  %3202 = vmatpush3.bf16.msra.mxu0 %v1288_v17 }
 0x55e   : > { %v1226_v19 = vsub.f32 %v1194_v52, %v1218_v18  ;;  %3487 = vpow2.f32 %v1237_v16  ;;  %3213 = vmatprep.subr.bf16.mxu0 %v3759_v14 }
 0x560   : > { %v1241_v20 = vmul.f32 1.442695, %v1226_v19  ;;  %v1382_v38 = vpop.permute.xlu1 %1381 }
 0x561   : > { %v1335_v21 = vpop.permute.xlu0 %1334 }
 0x562   : > { %3489 = vpow2.f32 %v1241_v20  ;;  %3208 = vmatpush3.bf16.msra.mxu1 %v1335_v21  ;;  %v3480_v22 = vpop.eup %3479 }
 0x563   : > { %3219 = vmatprep.subr.bf16.mxu1 %v3759_v14  ;;  %v1249_v23 = vsel %vm652_vm3, %v3480_v22, 0.0  ;;  %v3482_v24 = vpop.eup %3481 }
 0x564   : > { %1250 = vadd.xlane.f32.xlu1 %v1249_v23  ;;  %v1255_v26 = vsel %vm652_vm3, %v3482_v24, 0.0  ;;  %v1429_v39 = vpop.permute.xlu1 %1428 }
 0x566   : > { %v3484_v25 = vpop.eup %3483 }
 0x567   : > { %v1252_v27 = vsel %vm652_vm3, %v3484_v25, 0.0 }
 0x568   : > { %1256 = vadd.xlane.f32.xlu1 %v1255_v26  ;;  %1253 = vadd.xlane.f32.xlu0 %v1252_v27 }
 0x56a   : > { %v4145_v28 = vpop.eup %3485 }
 0x56b   : > { %v3488_v29 = vpop.eup %3487  ;;  %v1261_v30 = vsel %vm652_vm3, %v4145_v28, 0.0 }
 0x56c   : > { %1262 = vadd.xlane.f32.xlu1 %v1261_v30  ;;  %v1258_v33 = vsel %vm652_vm3, %v3488_v29, 0.0 }
 0x56d   : > { %1259 = vadd.xlane.f32.xlu0 %v1258_v33  ;;  %v1737_v33 = vld [vmem:[#allocation9 + $0x80] sm:$0xff] }
 0x56f   : > { %v3490_v36 = vpop.eup %3489 }
 0x570   : > { %v1264_v37 = vsel %vm652_vm3, %v3490_v36, 0.0 }
 0x571   : > { %1265 = vadd.xlane.f32.xlu0 %v1264_v37 }
 0x57d   : > { %1585 = vrot.lane.b32.xlu1 %v3990_v34, %s3766_s16 }
 0x581   : > { %1636 = vrot.lane.b32.xlu1 %v3986_v32, %s3766_s16 }
 0x585   : > { %1687 = vrot.lane.b32.xlu1 %v3992_v35, %s3766_s16 }
 0x587   : > { %1534 = vrot.lane.b32.xlu0 %v3984_v31, %s3766_s16 }
 0x589   : > { %1685 = vrot.lane.b32.xlu1 %v3992_v35, %s3767_s17 }
 0x58b   : > { %1532 = vrot.lane.b32.xlu0 %v3984_v31, %s3767_s17 }
 0x58f   : > { %1583 = vrot.lane.b32.xlu0 %v3990_v34, %s3767_s17 }
 0x593   : > { %1634 = vrot.lane.b32.xlu0 %v3986_v32, %s3767_s17 }
 0x5df   : > { %v1245_v40 = vpop.xlane.xlu1 %1244 }
 0x5e0   : > { %3491 = vrcp.f32 %v1245_v40 }
 0x5e3   : > { %v1248_v41 = vpop.xlane.xlu0 %1247 }
 0x5e4   : > { %3493 = vrcp.f32 %v1248_v41  ;;  %v1738_v41 = vld [vmem:[#allocation9 + $0x88] sm:$0xff] }
 0x5ed   : > { %v1251_v42 = vpop.xlane.xlu1 %1250  ;;  %v3492_v43 = vpop.eup %3491 }
 0x5ee   : > { %3495 = vrcp.f32 %v1251_v42  ;;  %v1275_v47 = vmul.f32 %v3492_v43, %v4132_v3  ;;  %v1739_v42 = vld [vmem:[#allocation9 + $0x90] sm:$0xff] }
 0x5f1   : > { %v3494_v44 = vpop.eup %3493  ;;  %v1257_v45 = vpop.xlane.xlu1 %1256 }
 0x5f2   : > { %v1254_v46 = vpop.xlane.xlu0 %1253  ;;  %v1276_v48 = vmul.f32 %v3494_v44, %v4136_v8 }
 0x5f3   : > { %3497 = vrcp.f32 %v1254_v46 }
 0x5f4   : > { %v1283_v49 = vpack.c.bf16 %v1276_v48, %v1275_v47  ;;  %3499 = vrcp.f32 %v1257_v45 }
 0x5f5   : > { %v1263_v50 = vpop.xlane.xlu1 %1262 }
 0x5f6   : > { %v1260_v51 = vpop.xlane.xlu0 %1259  ;;  %3204 = vmatmul.mubr.msk.bf16.vlgmr.msra.gmra.mxu0 %vm652_vm3, %v1283_v49 }
 0x5f7   : > { %3501 = vrcp.f32 %v1260_v51  ;;  %3214 = vmatpush3.bf16.msra.mxu0 %v1382_v38  ;;  %3215 = vmatprep.mubr.msk.bf16.mxu0 %vm3760_vm1, %v3759_v14  ;;  %v1741_v51 = vld [vmem:[#allocation9 + $0xa0] sm:$0xff] }
 0x5f8   : > { %3225 = vmatprep.subr.bf16.mxu0 %v3759_v14  ;;  %3503 = vrcp.f32 %v1263_v50  ;;  %v1740_v50 = vld [vmem:[#allocation9 + $0x98] sm:$0xff] }
 0x5f9   : > { %v1586_v63 = vpop.permute.xlu1 %1585 }
 0x5fa   : > { %v1266_v52 = vpop.xlane.xlu0 %1265  ;;  %v1591_v9 = vsel %vm438_vm2, %v1586_v63, 0 }
 0x5fb   : > { %3505 = vrcp.f32 %v1266_v52  ;;  %v3496_v53 = vpop.eup %3495 }
 0x5fc   : > { %v1277_v55 = vmul.f32 %v3496_v53, %v3480_v22 }
 0x5fd   : > { %v1637_v7 = vpop.permute.xlu1 %1636 }
 0x5fe   : > { %v1535_v0 = vpop.permute.xlu0 %1534  ;;  %v1642_v10 = vsel %vm438_vm2, %v1637_v7, 0 }
 0x5ff   : > { %v1540_v3 = vsel %vm438_vm2, %v1535_v0, 0 }
 0x600   : > { %v3498_v54 = vpop.eup %3497 }
 0x601   : > { %v1278_v56 = vmul.f32 %v3498_v54, %v3484_v25  ;;  %v3500_v57 = vpop.eup %3499  ;;  %v1688_v11 = vpop.permute.xlu1 %1687 }
 0x602   : > { %v1279_v60 = vmul.f32 %v3500_v57, %v3482_v24  ;;  %v1533_v8 = vpop.permute.xlu0 %1532  ;;  %v1693_v13 = vsel %vm438_vm2, %v1688_v11, 0 }
 0x603   : > { %v1284_v58 = vpack.c.bf16 %v1278_v56, %v1277_v55 }
 0x604   : > { %v3502_v59 = vpop.eup %3501 }
 0x605   : > { %3210 = vmatmul.mubr.msk.bf16.vlgmr.msra.gmra.mxu1 %vm652_vm3, %v1284_v58  ;;  %v1280_v61 = vmul.f32 %v3502_v59, %v3488_v29  ;;  %v3504_v62 = vpop.eup %3503  ;;  %v1686_v16 = vpop.permute.xlu1 %1685 }
 0x606   : > { %3220 = vmatpush3.bf16.msra.mxu1 %v1429_v39  ;;  %3221 = vmatprep.mubr.msk.bf16.mxu1 %vm3760_vm1, %v3759_v14  ;;  %v1281_v4 = vmul.f32 %v3504_v62, %v4145_v28  ;;  %v1584_v12 = vpop.permute.xlu0 %1583 }
 0x607   : > { %v1285_v1 = vpack.c.bf16 %v1280_v61, %v1279_v60  ;;  %3231 = vmatprep.subr.bf16.mxu1 %v3759_v14  ;;  %v1743_v60 = vld [vmem:[#allocation9 + $0xb0] sm:$0xff]  ;;  %v1742_v61 = vld [vmem:[#allocation9 + $0xa8] sm:$0xff] }
 0x608   : > { %v3506_v2 = vpop.eup %3505 }
 0x609   : > { %3216 = vmatmul.mubr.msk.bf16.vlgmr.msra.gmra.mxu0 %vm652_vm3, %v1285_v1  ;;  %v1282_v5 = vmul.f32 %v3506_v2, %v3490_v36 }
 0x60a   : > { %3226 = vmatpush3.bf16.xpose.msra.mxu0 %v1540_v3  ;;  %3227 = vmatprep.mubr.msk.bf16.mxu0 %vm3760_vm1, %v3759_v14  ;;  %v1635_v15 = vpop.permute.xlu0 %1634 }
 0x60b   : > { %v1286_v6 = vpack.c.bf16 %v1282_v5, %v1281_v4  ;;  %3237 = vmatprep.subr.bf16.mxu0 %v3759_v14 }
 0x60d   : > { %3222 = vmatmul.mubr.msk.bf16.vlgmr.msra.gmra.mxu1 %vm652_vm3, %v1286_v6  ;;  %v1744_v6 = vld [vmem:[#allocation9 + $0xb8] sm:$0xff] }
 0x60e   : > { %3232 = vmatpush3.bf16.xpose.msra.mxu1 %v1591_v9  ;;  %3233 = vmatprep.mubr.msk.bf16.mxu1 %vm3760_vm1, %v3759_v14 }
 0x60f   : > { %3243 = vmatprep.subr.bf16.mxu1 %v3759_v14 }
 0x611   : > { %3228 = vmatmul.mubr.msk.bf16.vlgmr.msra.gmra.mxu0 %vm438_vm2, %v1533_v8 }
 0x612   : > { %3238 = vmatpush3.bf16.xpose.msra.mxu0 %v1642_v10  ;;  %3239 = vmatprep.mubr.msk.bf16.mxu0 %vm3760_vm1, %v3759_v14 }
 0x613   : > { %3249 = vmatprep.subr.bf16.mxu0 %v3759_v14 }
 0x615   : > { %3234 = vmatmul.mubr.msk.bf16.vlgmr.msra.gmra.mxu1 %vm438_vm2, %v1584_v12 }
 0x616   : > { %3244 = vmatpush3.bf16.xpose.msra.mxu1 %v1693_v13  ;;  %3245 = vmatprep.mubr.msk.bf16.mxu1 %vm3760_vm1, %v3759_v14 }
 0x617   : > { %3255 = vmatprep.subr.bf16.mxu1 %v3759_v14 }
 0x619   : > { %3240 = vmatmul.mubr.msk.bf16.vlgmr.msra.gmra.mxu0 %vm438_vm2, %v1635_v15 }
 0x61a   : > { %3251 = vmatprep.mubr.msk.bf16.mxu0 %vm3760_vm1, %v3759_v14 }
 0x61d   : > { %3246 = vmatmul.mubr.msk.bf16.vlgmr.msra.gmra.mxu1 %vm438_vm2, %v1686_v16 }
 0x61e   : > { %3257 = vmatprep.mubr.msk.bf16.mxu1 %vm3760_vm1, %v3759_v14 }
 0x6b6   : > { %v4196_v17 = vpop.f32.mrf.mxu0 }
 0x6b8   : > { %v3205_v18 = vpop.f32.mrf.mxu0 }
 0x6ba   : > { %v4198_v19 = vpop.f32.mrf.mxu0 }
 0x6bc   : > { %v3206_v20 = vpop.f32.mrf.mxu0 }
 0x6c5   : > { %v4200_v21 = vpop.f32.mrf.mxu1 }
 0x6c7   : > { %v3211_v22 = vpop.f32.mrf.mxu1 }
 0x6c9   : > { %v4202_v23 = vpop.f32.mrf.mxu1  ;;  %v4204_v24 = vpop.f32.mrf.mxu0 }
 0x6cb   : > { %v3212_v25 = vpop.f32.mrf.mxu1  ;;  %v3217_v26 = vpop.f32.mrf.mxu0 }
 0x6cd   : > { %v4206_v27 = vpop.f32.mrf.mxu0  ;;  %v4208_v28 = vpop.f32.mrf.mxu1 }
 0x6cf   : > { %v3218_v29 = vpop.f32.mrf.mxu0  ;;  %v3223_v30 = vpop.f32.mrf.mxu1 }
 0x6d1   : > { %v4210_v36 = vpop.f32.mrf.mxu1  ;;  %v1576_v37 = vpop.f32.mrf.mxu0 }
 0x6d2   : > { %v1745_v38 = vadd.f32 %v1737_v33, %v1576_v37 }
 0x6d3   : > { %v3224_v39 = vpop.f32.mrf.mxu1  ;;  %v3229_v40 = vpop.f32.mrf.mxu0 }
 0x6d4   : > { %v1753_v43 = vsel %vm652_vm3, %v1745_v38, -inf }
 0x6d5   : > { %1754 = vmax.xlane.f32.xlu0 %v1753_v43  ;;  %v1579_v44 = vpop.f32.mrf.mxu0  ;;  %v1627_v45 = vpop.f32.mrf.mxu1 }
 0x6d6   : > { %v1746_v46 = vadd.f32 %v1738_v41, %v1579_v44  ;;  %v1747_v47 = vadd.f32 %v1739_v42, %v1627_v45 }
 0x6d7   : > { %v3230_v48 = vpop.f32.mrf.mxu0  ;;  %v3235_v49 = vpop.f32.mrf.mxu1 }
 0x6d8   : > { %v1756_v52 = vsel %vm652_vm3, %v1746_v46, -inf  ;;  %v1759_v53 = vsel %vm652_vm3, %v1747_v47, -inf }
 0x6d9   : > { %1757 = vmax.xlane.f32.xlu1 %v1756_v52  ;;  %1760 = vmax.xlane.f32.xlu0 %v1759_v53  ;;  %v1630_v54 = vpop.f32.mrf.mxu1  ;;  %v1678_v55 = vpop.f32.mrf.mxu0 }
 0x6da   : > { %v1748_v56 = vadd.f32 %v1740_v50, %v1630_v54  ;;  %v1749_v57 = vadd.f32 %v1741_v51, %v1678_v55 }
 0x6db   : > { %v3236_v58 = vpop.f32.mrf.mxu1  ;;  %v3241_v59 = vpop.f32.mrf.mxu0 }
 0x6dc   : > { %v1762_v62 = vsel %vm652_vm3, %v1748_v56, -inf  ;;  %v1765_v63 = vsel %vm652_vm3, %v1749_v57, -inf }
 0x6dd   : > { %1763 = vmax.xlane.f32.xlu0 %v1762_v62  ;;  %v1729_v0 = vpop.f32.mrf.mxu1  ;;  %1766 = vmax.xlane.f32.xlu1 %v1765_v63  ;;  %v1681_v1 = vpop.f32.mrf.mxu0 }
 0x6de   : > { %v1751_v2 = vadd.f32 %v1743_v60, %v1729_v0  ;;  %v1750_v3 = vadd.f32 %v1742_v61, %v1681_v1 }
 0x6df   : > { %v3242_v4 = vpop.f32.mrf.mxu0  ;;  %v3247_v5 = vpop.f32.mrf.mxu1 }
 0x6e0   : > { %v1771_v7 = vsel %vm652_vm3, %v1751_v2, -inf  ;;  %v1768_v8 = vsel %vm652_vm3, %v1750_v3, -inf }
 0x6e1   : > { %v1732_v9 = vpop.f32.mrf.mxu1  ;;  %1772 = vmax.xlane.f32.xlu1 %v1771_v7  ;;  %1769 = vmax.xlane.f32.xlu0 %v1768_v8 }
 0x6e2   : > { %v1752_v10 = vadd.f32 %v1744_v6, %v1732_v9 }
 0x6e3   : > { %v3248_v11 = vpop.f32.mrf.mxu1 }
 0x6e4   : > { %v1774_v12 = vsel %vm652_vm3, %v1752_v10, -inf }
 0x6e5   : > { %1775 = vmax.xlane.f32.xlu0 %v1774_v12 }
 0x6f2   : > { %1845 = vrot.lane.b32.xlu1 %v3984_v31, %s3768_s14 }
 0x6f6   : > { %1939 = vrot.lane.b32.xlu1 %v3986_v32, %s3768_s14 }
 0x6fa   : > { %1986 = vrot.lane.b32.xlu1 %v3992_v35, %s3768_s14 }
 0x6fb   : > { %1892 = vrot.lane.b32.xlu0 %v3990_v34, %s3768_s14  ;;  %s4453_s14 = scalar_lea.hbm %s4507_s6, %s3040_s7 }
 0x75e   : > { %v1755_v13 = vpop.xlane.xlu0 %1754 }
 0x75f   : > { %v1777_v15 = vsub.f32 %v1745_v38, %v1755_v13 }
 0x761   : > { %v1785_v16 = vmul.f32 1.442695, %v1777_v15 }
 0x762   : > { %v1758_v18 = vpop.xlane.xlu1 %1757  ;;  %v1761_v20 = vpop.xlane.xlu0 %1760 }
 0x763   : > { %3507 = vpow2.f32 %v1785_v16  ;;  %v1778_v22 = vsub.f32 %v1746_v46, %v1758_v18  ;;  %v1779_v25 = vsub.f32 %v1747_v47, %v1761_v20 }
 0x765   : > { %v1787_v26 = vmul.f32 1.442695, %v1778_v22  ;;  %v1789_v29 = vmul.f32 1.442695, %v1779_v25 }
 0x766   : > { %v1767_v30 = vpop.xlane.xlu1 %1766  ;;  %v1764_v33 = vpop.xlane.xlu0 %1763 }
 0x767   : > { %3509 = vpow2.f32 %v1787_v26  ;;  %v1781_v37 = vsub.f32 %v1749_v57, %v1767_v30  ;;  %v1780_v39 = vsub.f32 %v1748_v56, %v1764_v33 }
 0x768   : > { %3511 = vpow2.f32 %v1789_v29 }
 0x769   : > { %v1793_v40 = vmul.f32 1.442695, %v1781_v37  ;;  %v1791_v41 = vmul.f32 1.442695, %v1780_v39 }
 0x76a   : > { %v1773_v42 = vpop.xlane.xlu1 %1772  ;;  %v1770_v43 = vpop.xlane.xlu0 %1769 }
 0x76b   : > { %3513 = vpow2.f32 %v1793_v40  ;;  %v1783_v38 = vsub.f32 %v1751_v2, %v1773_v42  ;;  %v1782_v44 = vsub.f32 %v1750_v3, %v1770_v43 }
 0x76c   : > { %3515 = vpow2.f32 %v1791_v41 }
 0x76d   : > { %v1797_v45 = vmul.f32 1.442695, %v1783_v38  ;;  %v1795_v48 = vmul.f32 1.442695, %v1782_v44 }
 0x76e   : > { %v1846_v46 = vpop.permute.xlu1 %1845  ;;  %v1776_v47 = vpop.xlane.xlu0 %1775 }
 0x76f   : > { %3517 = vpow2.f32 %v1797_v45  ;;  %v1784_v49 = vsub.f32 %v1752_v10, %v1776_v47  ;;  %3250 = vmatpush3.bf16.msra.mxu0 %v1846_v46 }
 0x770   : > { %v3508_v50 = vpop.eup %3507  ;;  %3519 = vpow2.f32 %v1795_v48  ;;  %3261 = vmatprep.subr.bf16.mxu0 %v3759_v14 }
 0x771   : > { %v1799_v51 = vmul.f32 1.442695, %v1784_v49  ;;  %v1801_v52 = vsel %vm652_vm3, %v3508_v50, 0.0 }
 0x772   : > { %1802 = vadd.xlane.f32.xlu1 %v1801_v52  ;;  %v1893_v53 = vpop.permute.xlu0 %1892  ;;  %v1940_v4 = vpop.permute.xlu1 %1939 }
 0x773   : > { %3521 = vpow2.f32 %v1799_v51  ;;  %3256 = vmatpush3.bf16.msra.mxu1 %v1893_v53 }
 0x774   : > { %v3510_v54 = vpop.eup %3509  ;;  %3267 = vmatprep.subr.bf16.mxu1 %v3759_v14 }
 0x775   : > { %v3512_v55 = vpop.eup %3511  ;;  %v1804_v56 = vsel %vm652_vm3, %v3510_v54, 0.0 }
 0x776   : > { %1805 = vadd.xlane.f32.xlu0 %v1804_v56  ;;  %v1807_v57 = vsel %vm652_vm3, %v3512_v55, 0.0  ;;  %v1987_v5 = vpop.permute.xlu1 %1986 }
 0x777   : > { %1808 = vadd.xlane.f32.xlu1 %v1807_v57 }
 0x778   : > { %v3514_v58 = vpop.eup %3513 }
 0x779   : > { %v3516_v59 = vpop.eup %3515  ;;  %v1813_v60 = vsel %vm652_vm3, %v3514_v58, 0.0 }
 0x77a   : > { %v1810_v61 = vsel %vm652_vm3, %v3516_v59, 0.0 }
 0x77b   : > { %1814 = vadd.xlane.f32.xlu1 %v1813_v60  ;;  %1811 = vadd.xlane.f32.xlu0 %v1810_v61 }
 0x77c   : > { %v4231_v62 = vpop.eup %3517 }
 0x77d   : > { %v3520_v63 = vpop.eup %3519  ;;  %v1819_v0 = vsel %vm652_vm3, %v4231_v62, 0.0 }
 0x77e   : > { %v1816_v1 = vsel %vm652_vm3, %v3520_v63, 0.0 }
 0x77f   : > { %1820 = vadd.xlane.f32.xlu1 %v1819_v0  ;;  %1817 = vadd.xlane.f32.xlu0 %v1816_v1 }
 0x780   : > { %v3522_v2 = vpop.eup %3521 }
 0x781   : > { %v1822_v3 = vsel %vm652_vm3, %v3522_v2, 0.0 }
 0x783   : > { %1823 = vadd.xlane.f32.xlu0 %v1822_v3 }
 0x790   : > { %2143 = vrot.lane.b32.xlu1 %v3990_v34, %s3769_s18 }
 0x794   : > { %2194 = vrot.lane.b32.xlu1 %v3986_v32, %s3769_s18 }
 0x798   : > { %2245 = vrot.lane.b32.xlu1 %v3992_v35, %s3769_s18 }
 0x799   : > { %2092 = vrot.lane.b32.xlu0 %v3984_v31, %s3769_s18  ;;  %s3677_s18 = scalar_lea.vmem %s4456_s26, 1024 }
 0x79a   : > { %p3678_p4 = scmp.ne.s32.totalorder %s4456_s26, %s3677_s18 }
 0x79c   : > { %2243 = vrot.lane.b32.xlu1 %v3992_v35, %s3770_s12  ;;  %p3679_p12 = pnand %p3678_p4, %p4529_p6 }
 0x79d   : > { %2090 = vrot.lane.b32.xlu0 %v3984_v31, %s3770_s12 }
 0x79e   : > { %p3680_p0 = pneg %p3679_p12 }
 0x7a1   : > { %2141 = vrot.lane.b32.xlu0 %v3990_v34, %s3770_s12 }
 0x7a5   : > { %2192 = vrot.lane.b32.xlu0 %v3986_v32, %s3770_s12  ;;  %s3775_s12 = smov [#allocation11]  }
 0x7fb   : > { %v1803_v6 = vpop.xlane.xlu1 %1802 }
 0x7fc   : > { %3523 = vrcp.f32 %v1803_v6 }
 0x7ff   : > { %v1806_v7 = vpop.xlane.xlu0 %1805 }
 0x800   : > { %v1809_v8 = vpop.xlane.xlu1 %1808  ;;  %3525 = vrcp.f32 %v1806_v7 }
 0x801   : > { %3527 = vrcp.f32 %v1809_v8 }
 0x804   : > { %v1815_v9 = vpop.xlane.xlu1 %1814  ;;  %v1812_v10 = vpop.xlane.xlu0 %1811 }
 0x805   : > { %3529 = vrcp.f32 %v1812_v10 }
 0x806   : > { %3531 = vrcp.f32 %v1815_v9  ;;  %v2295_v9 = vld [vmem:[#allocation9 + $0xc0] sm:$0xff] }
 0x808   : > { %v1821_v11 = vpop.xlane.xlu1 %1820  ;;  %v1818_v12 = vpop.xlane.xlu0 %1817 }
 0x809   : > { %3533 = vrcp.f32 %v1818_v12  ;;  %v3524_v13 = vpop.eup %3523 }
 0x80a   : > { %3535 = vrcp.f32 %v1821_v11  ;;  %v1833_v18 = vmul.f32 %v3524_v13, %v3508_v50 }
 0x80c   : > { %v1824_v15 = vpop.xlane.xlu0 %1823  ;;  %v2144_v43 = vpop.permute.xlu1 %2143 }
 0x80d   : > { %v3526_v16 = vpop.eup %3525  ;;  %3537 = vrcp.f32 %v1824_v15  ;;  %v2149_v52 = vsel %vm438_vm2, %v2144_v43, 0 }
 0x80e   : > { %v1834_v20 = vmul.f32 %v3526_v16, %v3510_v54  ;;  %v3528_v25 = vpop.eup %3527  ;;  %v2296_v16 = vld [vmem:[#allocation9 + $0xc8] sm:$0xff] }
 0x80f   : > { %v1835_v29 = vmul.f32 %v3528_v25, %v3512_v55 }
 0x810   : > { %v1841_v22 = vpack.c.bf16 %v1834_v20, %v1833_v18  ;;  %v2093_v38 = vpop.permute.xlu0 %2092  ;;  %v2195_v50 = vpop.permute.xlu1 %2194  ;;  %v2297_v18 = vld [vmem:[#allocation9 + $0xd0] sm:$0xff] }
 0x811   : > { %v2098_v47 = vsel %vm438_vm2, %v2093_v38, 0  ;;  %v2200_v53 = vsel %vm438_vm2, %v2195_v50, 0 }
 0x812   : > { %3252 = vmatmul.mubr.msk.bf16.vlgmr.msra.gmra.mxu0 %vm652_vm3, %v1841_v22  ;;  %v3530_v26 = vpop.eup %3529 }
 0x813   : > { %3262 = vmatpush3.bf16.msra.mxu0 %v1940_v4  ;;  %3263 = vmatprep.mubr.msk.bf16.mxu0 %vm3760_vm1, %v3759_v14  ;;  %v1836_v30 = vmul.f32 %v3530_v26, %v3516_v59  ;;  %v3532_v33 = vpop.eup %3531 }
 0x814   : > { %3273 = vmatprep.subr.bf16.mxu0 %v3759_v14  ;;  %v1837_v41 = vmul.f32 %v3532_v33, %v3514_v58  ;;  %v2091_v51 = vpop.permute.xlu0 %2090  ;;  %v2246_v54 = vpop.permute.xlu1 %2245 }
 0x815   : > { %v1842_v37 = vpack.c.bf16 %v1836_v30, %v1835_v29  ;;  %v2251_v56 = vsel %vm438_vm2, %v2246_v54, 0 }
 0x816   : > { %v3534_v39 = vpop.eup %3533 }
 0x817   : > { %v3536_v40 = vpop.eup %3535  ;;  %3258 = vmatmul.mubr.msk.bf16.vlgmr.msra.gmra.mxu1 %vm652_vm3, %v1842_v37  ;;  %v1838_v42 = vmul.f32 %v3534_v39, %v3520_v63  ;;  %v2298_v37 = vld [vmem:[#allocation9 + $0xd8] sm:$0xff]  ;;  %v2299_v39 = vld [vmem:[#allocation9 + $0xe0] sm:$0xff] }
 0x818   : > { %3268 = vmatpush3.bf16.msra.mxu1 %v1987_v5  ;;  %3269 = vmatprep.mubr.msk.bf16.mxu1 %vm3760_vm1, %v3759_v14  ;;  %v1839_v48 = vmul.f32 %v3536_v40, %v4231_v62  ;;  %v2142_v55 = vpop.permute.xlu0 %2141  ;;  %v2244_v58 = vpop.permute.xlu1 %2243 }
 0x819   : > { %v1843_v45 = vpack.c.bf16 %v1838_v42, %v1837_v41  ;;  %3279 = vmatprep.subr.bf16.mxu1 %v3759_v14 }
 0x81a   : > { %v3538_v44 = vpop.eup %3537 }
 0x81b   : > { %v1840_v46 = vmul.f32 %v3538_v44, %v3522_v2  ;;  %3264 = vmatmul.mubr.msk.bf16.vlgmr.msra.gmra.mxu0 %vm652_vm3, %v1843_v45 }
 0x81c   : > { %3274 = vmatpush3.bf16.xpose.msra.mxu0 %v2098_v47  ;;  %3275 = vmatprep.mubr.msk.bf16.mxu0 %vm3760_vm1, %v3759_v14  ;;  %v2193_v57 = vpop.permute.xlu0 %2192  ;;  %v2300_v47 = vld [vmem:[#allocation9 + $0xe8] sm:$0xff] }
 0x81d   : > { %v1844_v49 = vpack.c.bf16 %v1840_v46, %v1839_v48  ;;  %3285 = vmatprep.subr.bf16.mxu0 %v3759_v14  ;;  %v2301_v46 = vld [vmem:[#allocation9 + $0xf0] sm:$0xff] }
 0x81f   : > { %3270 = vmatmul.mubr.msk.bf16.vlgmr.msra.gmra.mxu1 %vm652_vm3, %v1844_v49 }
 0x820   : > { %3280 = vmatpush3.bf16.xpose.msra.mxu1 %v2149_v52  ;;  %3281 = vmatprep.mubr.msk.bf16.mxu1 %vm3760_vm1, %v3759_v14 }
 0x821   : > { %3291 = vmatprep.subr.bf16.mxu1 %v3759_v14 }
 0x823   : > { %3276 = vmatmul.mubr.msk.bf16.vlgmr.msra.gmra.mxu0 %vm438_vm2, %v2091_v51 }
 0x824   : > { %3286 = vmatpush3.bf16.xpose.msra.mxu0 %v2200_v53  ;;  %3287 = vmatprep.mubr.msk.bf16.mxu0 %vm3760_vm1, %v3759_v14 }
 0x825   : > { %3297 = vmatprep.subr.bf16.mxu0 %v3759_v14 }
 0x827   : > { %3282 = vmatmul.mubr.msk.bf16.vlgmr.msra.gmra.mxu1 %vm438_vm2, %v2142_v55 }
 0x828   : > { %3292 = vmatpush3.bf16.xpose.msra.mxu1 %v2251_v56  ;;  %3293 = vmatprep.mubr.msk.bf16.mxu1 %vm3760_vm1, %v3759_v14 }
 0x829   : > { %3303 = vmatprep.subr.bf16.mxu1 %v3759_v14 }
 0x82b   : > { %3288 = vmatmul.mubr.msk.bf16.vlgmr.msra.gmra.mxu0 %vm438_vm2, %v2193_v57  ;;  %v2302_v57 = vld [vmem:[#allocation9 + $0xf8] sm:$0xff] }
 0x82c   : > { %3299 = vmatprep.mubr.msk.bf16.mxu0 %vm3760_vm1, %v3759_v14 }
 0x82f   : > { %3294 = vmatmul.mubr.msk.bf16.vlgmr.msra.gmra.mxu1 %vm438_vm2, %v2244_v58 }
 0x830   : > { %3305 = vmatprep.mubr.msk.bf16.mxu1 %vm3760_vm1, %v3759_v14 }
 0x8d2   : > { %v4280_v59 = vpop.f32.mrf.mxu0 }
 0x8d4   : > { %v3253_v60 = vpop.f32.mrf.mxu0 }
 0x8d6   : > { %v4282_v61 = vpop.f32.mrf.mxu0 }
 0x8d7   : > { %v4284_v62 = vpop.f32.mrf.mxu1 }
 0x8d8   : > { %v3254_v63 = vpop.f32.mrf.mxu0 }
 0x8d9   : > { %v3259_v0 = vpop.f32.mrf.mxu1 }
 0x8db   : > { %v4286_v1 = vpop.f32.mrf.mxu1  ;;  %v4288_v2 = vpop.f32.mrf.mxu0 }
 0x8dd   : > { %v3260_v3 = vpop.f32.mrf.mxu1  ;;  %v3265_v4 = vpop.f32.mrf.mxu0 }
 0x8df   : > { %v4290_v5 = vpop.f32.mrf.mxu0  ;;  %v4292_v6 = vpop.f32.mrf.mxu1 }
 0x8e1   : > { %v3266_v7 = vpop.f32.mrf.mxu0  ;;  %v3271_v8 = vpop.f32.mrf.mxu1 }
 0x8e3   : > { %v4294_v10 = vpop.f32.mrf.mxu1  ;;  %v2134_v11 = vpop.f32.mrf.mxu0 }
 0x8e4   : > { %v2303_v12 = vadd.f32 %v2295_v9, %v2134_v11 }
 0x8e5   : > { %v3272_v13 = vpop.f32.mrf.mxu1  ;;  %v3277_v15 = vpop.f32.mrf.mxu0 }
 0x8e6   : > { %v2311_v20 = vsel %vm652_vm3, %v2303_v12, -inf }
 0x8e7   : > { %2312 = vmax.xlane.f32.xlu0 %v2311_v20  ;;  %v2137_v22 = vpop.f32.mrf.mxu0  ;;  %v2185_v25 = vpop.f32.mrf.mxu1 }
 0x8e8   : > { %v2304_v26 = vadd.f32 %v2296_v16, %v2137_v22  ;;  %v2305_v29 = vadd.f32 %v2297_v18, %v2185_v25 }
 0x8e9   : > { %v3278_v30 = vpop.f32.mrf.mxu0  ;;  %v3283_v33 = vpop.f32.mrf.mxu1 }
 0x8ea   : > { %v2314_v40 = vsel %vm652_vm3, %v2304_v26, -inf  ;;  %v2317_v41 = vsel %vm652_vm3, %v2305_v29, -inf }
 0x8eb   : > { %2315 = vmax.xlane.f32.xlu1 %v2314_v40  ;;  %2318 = vmax.xlane.f32.xlu0 %v2317_v41  ;;  %v2188_v42 = vpop.f32.mrf.mxu1  ;;  %v2236_v43 = vpop.f32.mrf.mxu0 }
 0x8ec   : > { %v2306_v38 = vadd.f32 %v2298_v37, %v2188_v42  ;;  %v2307_v44 = vadd.f32 %v2299_v39, %v2236_v43 }
 0x8ed   : > { %v3284_v45 = vpop.f32.mrf.mxu1  ;;  %v3289_v48 = vpop.f32.mrf.mxu0 }
 0x8ee   : > { %v2320_v49 = vsel %vm652_vm3, %v2306_v38, -inf  ;;  %v2323_v50 = vsel %vm652_vm3, %v2307_v44, -inf }
 0x8ef   : > { %2321 = vmax.xlane.f32.xlu0 %v2320_v49  ;;  %v2287_v51 = vpop.f32.mrf.mxu1  ;;  %2324 = vmax.xlane.f32.xlu1 %v2323_v50  ;;  %v2239_v52 = vpop.f32.mrf.mxu0 }
 0x8f0   : > { %v2309_v53 = vadd.f32 %v2301_v46, %v2287_v51  ;;  %v2308_v54 = vadd.f32 %v2300_v47, %v2239_v52 }
 0x8f1   : > { %v3290_v55 = vpop.f32.mrf.mxu0  ;;  %v3295_v56 = vpop.f32.mrf.mxu1 }
 0x8f2   : > { %v2329_v58 = vsel %vm652_vm3, %v2309_v53, -inf  ;;  %v2326_v60 = vsel %vm652_vm3, %v2308_v54, -inf }
 0x8f3   : > { %v2290_v63 = vpop.f32.mrf.mxu1  ;;  %2330 = vmax.xlane.f32.xlu1 %v2329_v58  ;;  %2327 = vmax.xlane.f32.xlu0 %v2326_v60 }
 0x8f4   : > { %v2310_v0 = vadd.f32 %v2302_v57, %v2290_v63 }
 0x8f5   : > { %v3296_v3 = vpop.f32.mrf.mxu1 }
 0x8f6   : > { %v2332_v4 = vsel %vm652_vm3, %v2310_v0, -inf  ;;  %v3018_v3 = vpack.c.bf16 %v4202_v23, %v4202_v23  ;;  %v3025_v23 = vpack.c.bf16 %v4284_v62, %v4284_v62  ;;  %v3030_v62 = vpack.c.bf16 %v4294_v10, %v4294_v10 }
 0x8f7   : > { %2333 = vmax.xlane.f32.xlu0 %v2332_v4  ;;  %v3015_v4 = vpack.c.bf16 %v4196_v17, %v4196_v17  ;;  %v3023_v17 = vpack.c.bf16 %v4280_v59, %v4280_v59  ;;  %v3028_v59 = vpack.c.bf16 %v4290_v5, %v4290_v5 }
 0x904   : > { %2403 = vrot.lane.b32.xlu1 %v3984_v31, %s3771_s10 }
 0x970   : > { %v2313_v7 = vpop.xlane.xlu0 %2312 }
 0x971   : > { %v2335_v8 = vsub.f32 %v2303_v12, %v2313_v7 }
 0x973   : > { %v2343_v9 = vmul.f32 1.442695, %v2335_v8 }
 0x974   : > { %v2316_v11 = vpop.xlane.xlu1 %2315  ;;  %v2319_v13 = vpop.xlane.xlu0 %2318 }
 0x975   : > { %3539 = vpow2.f32 %v2343_v9  ;;  %v2336_v15 = vsub.f32 %v2304_v26, %v2316_v11  ;;  %v2337_v16 = vsub.f32 %v2305_v29, %v2319_v13 }
 0x977   : > { %v2345_v18 = vmul.f32 1.442695, %v2336_v15  ;;  %v2347_v20 = vmul.f32 1.442695, %v2337_v16 }
 0x978   : > { %v2325_v22 = vpop.xlane.xlu1 %2324  ;;  %v2322_v25 = vpop.xlane.xlu0 %2321 }
 0x979   : > { %3541 = vpow2.f32 %v2345_v18  ;;  %v2339_v30 = vsub.f32 %v2307_v44, %v2325_v22  ;;  %v2338_v33 = vsub.f32 %v2306_v38, %v2322_v25 }
 0x97a   : > { %3543 = vpow2.f32 %v2347_v20 }
 0x97b   : > { %v2351_v37 = vmul.f32 1.442695, %v2339_v30  ;;  %v2349_v39 = vmul.f32 1.442695, %v2338_v33 }
 0x97c   : > { %v2331_v40 = vpop.xlane.xlu1 %2330  ;;  %v2328_v31 = vpop.xlane.xlu0 %2327 }
 0x97d   : > { %3545 = vpow2.f32 %v2351_v37  ;;  %v2341_v12 = vsub.f32 %v2309_v53, %v2331_v40  ;;  %v2340_v41 = vsub.f32 %v2308_v54, %v2328_v31 }
 0x97e   : > { %3547 = vpow2.f32 %v2349_v39 }
 0x97f   : > { %v2355_v42 = vmul.f32 1.442695, %v2341_v12  ;;  %v2353_v43 = vmul.f32 1.442695, %v2340_v41 }
 0x980   : > { %v2404_v26 = vpop.permute.xlu1 %2403  ;;  %v2334_v29 = vpop.xlane.xlu0 %2333 }
 0x981   : > { %3549 = vpow2.f32 %v2355_v42  ;;  %v2342_v45 = vsub.f32 %v2310_v0, %v2334_v29  ;;  %3298 = vmatpush3.bf16.msra.mxu0 %v2404_v26  ;;  %v3016_v0 = vpack.c.bf16 %v4198_v19, %v4198_v19  ;;  %v3020_v19 = vpack.c.bf16 %v4206_v27, %v4206_v27 }
 0x982   : > { %v4306_v48 = vpop.eup %3539  ;;  %3551 = vpow2.f32 %v2353_v43  ;;  %3309 = vmatprep.subr.bf16.mxu0 %v3759_v14  ;;  %v3021_v27 = vpack.c.bf16 %v4208_v28, %v4208_v28 }
 0x983   : > { %v2357_v38 = vmul.f32 1.442695, %v2342_v45  ;;  %v2359_v44 = vsel %vm652_vm3, %v4306_v48, 0.0 }
 0x984   : > { %2360 = vadd.xlane.f32.xlu1 %v2359_v44 }
 0x985   : > { %3553 = vpow2.f32 %v2357_v38 }
 0x986   : > { %v4311_v46 = vpop.eup %3541 }
 0x987   : > { %v4313_v47 = vpop.eup %3543  ;;  %v2362_v49 = vsel %vm652_vm3, %v4311_v46, 0.0 }
 0x988   : > { %2363 = vadd.xlane.f32.xlu0 %v2362_v49  ;;  %v2365_v50 = vsel %vm652_vm3, %v4313_v47, 0.0 }
 0x989   : > { %2366 = vadd.xlane.f32.xlu1 %v2365_v50 }
 0x98a   : > { %v4319_v51 = vpop.eup %3545 }
 0x98b   : > { %v4321_v52 = vpop.eup %3547  ;;  %v2371_v53 = vsel %vm652_vm3, %v4319_v51, 0.0 }
 0x98c   : > { %v2368_v54 = vsel %vm652_vm3, %v4321_v52, 0.0 }
 0x98d   : > { %2372 = vadd.xlane.f32.xlu1 %v2371_v53  ;;  %2369 = vadd.xlane.f32.xlu0 %v2368_v54 }
 0x98e   : > { %v4327_v55 = vpop.eup %3549 }
 0x98f   : > { %v4329_v56 = vpop.eup %3551  ;;  %v2377_v57 = vsel %vm652_vm3, %v4327_v55, 0.0 }
 0x990   : > { %v2374_v58 = vsel %vm652_vm3, %v4329_v56, 0.0 }
 0x991   : > { %2378 = vadd.xlane.f32.xlu1 %v2377_v57  ;;  %2375 = vadd.xlane.f32.xlu0 %v2374_v58 }
 0x992   : > { %v4335_v60 = vpop.eup %3553 }
 0x993   : > { %v2380_v63 = vsel %vm652_vm3, %v4335_v60, 0.0 }
 0x995   : > { %2381 = vadd.xlane.f32.xlu0 %v2380_v63 }
 0x9a2   : > { %2497 = vrot.lane.b32.xlu1 %v3986_v32, %s3771_s10  ;;  %v3024_v32 = vpack.c.bf16 %v4282_v61, %v4282_v61  ;;  %v3019_v61 = vpack.c.bf16 %v4204_v24, %v4204_v24  ;;  %v3029_v24 = vpack.c.bf16 %v4292_v6, %v4292_v6 }
 0x9a6   : > { %2544 = vrot.lane.b32.xlu1 %v3992_v35, %s3771_s10  ;;  %v3017_v35 = vpack.c.bf16 %v4200_v21, %v4200_v21  ;;  %v3022_v21 = vpack.c.bf16 %v4210_v36, %v4210_v36  ;;  %v3027_v36 = vpack.c.bf16 %v4288_v2, %v4288_v2 }
 0x9aa   : > { %1501 = vrot.lane.b32.xlu1 %v3016_v0, %s3772_s27  ;;  %v3437_v0 = vld [vmem:[#allocation8 + $0x8] sm:$0xff]  }
 0x9ab   : > { %2450 = vrot.lane.b32.xlu0 %v3990_v34, %s3771_s10  ;;  %v3026_v34 = vpack.c.bf16 %v4286_v1, %v4286_v1  ;;  %s3681_s10 = sshll.u32 %s3775_s12, 4  ;;  %s3682_s10 = int_to_ptr.vmem [resolvable:$false] %s3681_s10 }
 0x9ac   : > { %p3684_p5 = scmp.lt.s32.totalorder %s4456_s26, %s3682_s10 }
 0x9ae   : > { %1505 = vrot.lane.b32.xlu1 %v3018_v3, %s3772_s27 }
 0x9af   : > { %1499 = vrot.lane.b32.xlu0 %v3015_v4, %s3772_s27 }
 0x9b2   : > { %2059 = vrot.lane.b32.xlu1 %v3024_v32, %s3773_s29 }
 0x9b3   : > { %1503 = vrot.lane.b32.xlu0 %v3017_v35, %s3772_s27  ;;  %v3438_v35 = vld [vmem:[#allocation8] sm:$0xff]  }
 0x9b6   : > { %2063 = vrot.lane.b32.xlu1 %v3026_v34, %s3773_s29 }
 0x9b7   : > { %2057 = vrot.lane.b32.xlu0 %v3023_v17, %s3773_s29 }
 0x9ba   : > { %1509 = vrot.lane.b32.xlu1 %v3020_v19, %s3772_s27 }
 0x9bb   : > { %2061 = vrot.lane.b32.xlu0 %v3025_v23, %s3773_s29 }
 0x9be   : > { %1513 = vrot.lane.b32.xlu1 %v3022_v21, %s3772_s27 }
 0x9bf   : > { %1507 = vrot.lane.b32.xlu0 %v3019_v61, %s3772_s27 }
 0x9c2   : > { %2067 = vrot.lane.b32.xlu1 %v3028_v59, %s3773_s29 }
 0x9c3   : > { %1511 = vrot.lane.b32.xlu0 %v3021_v27, %s3772_s27 }
 0x9c6   : > { %2071 = vrot.lane.b32.xlu1 %v3030_v62, %s3773_s29 }
 0x9c7   : > { %2065 = vrot.lane.b32.xlu0 %v3027_v36, %s3773_s29 }
 0x9cb   : > { %2069 = vrot.lane.b32.xlu0 %v3029_v24, %s3773_s29  ;;  %s3683_s29 = scalar_lea.vmem %s3682_s10, 2048 }
 0x9cc   : > { %p3685_p3 = scmp.lt.s32.totalorder %s3683_s29, %s3677_s18 }
 0x9ce   : > { %p3686_p7 = por %p3685_p3, %p3684_p5 }
 0x9d0   : > { %p3687_p9 = pnand %p3686_p7, %p3680_p0 }
 0xa0d   : > { %v2361_v1 = vpop.xlane.xlu1 %2360 }
 0xa0e   : > { %3555 = vrcp.f32 %v2361_v1 }
 0xa11   : > { %v2364_v5 = vpop.xlane.xlu0 %2363 }
 0xa12   : > { %v2367_v7 = vpop.xlane.xlu1 %2366  ;;  %3557 = vrcp.f32 %v2364_v5 }
 0xa13   : > { %3559 = vrcp.f32 %v2367_v7 }
 0xa16   : > { %v2373_v28 = vpop.xlane.xlu1 %2372  ;;  %v2370_v8 = vpop.xlane.xlu0 %2369 }
 0xa17   : > { %3561 = vrcp.f32 %v2370_v8 }
 0xa18   : > { %3563 = vrcp.f32 %v2373_v28 }
 0xa1a   : > { %v2379_v10 = vpop.xlane.xlu1 %2378  ;;  %v2376_v9 = vpop.xlane.xlu0 %2375 }
 0xa1b   : > { %3565 = vrcp.f32 %v2376_v9  ;;  %v3556_v2 = vpop.eup %3555 }
 0xa1c   : > { %3567 = vrcp.f32 %v2379_v10  ;;  %v2391_v6 = vmul.f32 %v3556_v2, %v4306_v48 }
 0xa1e   : > { %v2498_v11 = vpop.permute.xlu1 %2497  ;;  %v2382_v13 = vpop.xlane.xlu0 %2381 }
 0xa1f   : > { %v3558_v15 = vpop.eup %3557  ;;  %3569 = vrcp.f32 %v2382_v13 }
 0xa20   : > { %v2392_v16 = vmul.f32 %v3558_v15, %v4311_v46  ;;  %v3560_v25 = vpop.eup %3559 }
 0xa21   : > { %v2393_v39 = vmul.f32 %v3560_v25, %v4313_v47 }
 0xa22   : > { %v2545_v18 = vpop.permute.xlu1 %2544  ;;  %v2451_v20 = vpop.permute.xlu0 %2450  ;;  %v2399_v22 = vpack.c.bf16 %v2392_v16, %v2391_v6 }
 0xa23   : > { %3304 = vmatpush3.bf16.msra.mxu1 %v2451_v20 }
 0xa24   : > { %3300 = vmatmul.mubr.msk.bf16.vlgmr.msra.gmra.mxu0 %vm652_vm3, %v2399_v22  ;;  %3315 = vmatprep.subr.bf16.mxu1 %v3759_v14  ;;  %v3562_v30 = vpop.eup %3561 }
 0xa25   : > { %3310 = vmatpush3.bf16.msra.mxu0 %v2498_v11  ;;  %3311 = vmatprep.mubr.msk.bf16.mxu0 %vm3760_vm1, %v3759_v14  ;;  %v2394_v40 = vmul.f32 %v3562_v30, %v4321_v52  ;;  %v3564_v31 = vpop.eup %3563 }
 0xa26   : > { %v1502_v33 = vpop.permute.xlu1 %1501  ;;  %v1500_v37 = vpop.permute.xlu0 %1499  ;;  %v2395_v29 = vmul.f32 %v3564_v31, %v4319_v51  ;;  %3321 = vmatprep.subr.bf16.mxu0 %v3437_v0 }
 0xa27   : > { %1525 = vst.msk [vmem:[#allocation2 + $0x4] sm:$0xf] %vm1523_vm5, %v1502_v33  ;;  %1524 = vst.msk [vmem:[#allocation2] sm:$0xf] %vm1523_vm5, %v1500_v37  ;;  %v2400_v12 = vpack.c.bf16 %v2394_v40, %v2393_v39  ;;  %v2988_v40 = vld [vmem:[%s4505_s4] ss:$0 sm:$0xff] }
 0xa28   : > { %v3566_v41 = vpop.eup %3565 }
 0xa29   : > { %v3568_v42 = vpop.eup %3567  ;;  %3306 = vmatmul.mubr.msk.bf16.vlgmr.msra.gmra.mxu1 %vm652_vm3, %v2400_v12  ;;  %v2396_v45 = vmul.f32 %v3566_v41, %v4329_v56 }
 0xa2a   : > { %v1506_v43 = vpop.permute.xlu1 %1505  ;;  %v1504_v26 = vpop.permute.xlu0 %1503  ;;  %3316 = vmatpush3.bf16.msra.mxu1 %v2545_v18  ;;  %3317 = vmatprep.mubr.msk.bf16.mxu1 %vm3760_vm1, %v3759_v14  ;;  %v2397_v44 = vmul.f32 %v3568_v42, %v4327_v55 }
 0xa2b   : > { %1527 = vst.msk [vmem:[#allocation2 + $0xc] sm:$0xf] %vm1523_vm5, %v1506_v43  ;;  %1526 = vst.msk [vmem:[#allocation2 + $0x8] sm:$0xf] %vm1523_vm5, %v1504_v26  ;;  %v2401_v38 = vpack.c.bf16 %v2396_v45, %v2395_v29 }
 0xa2c   : > { %v3570_v48 = vpop.eup %3569 }
 0xa2d   : > { %v2398_v46 = vmul.f32 %v3570_v48, %v4335_v60  ;;  %3312 = vmatmul.mubr.msk.bf16.vlgmr.msra.gmra.mxu0 %vm652_vm3, %v2401_v38 }
 0xa2e   : > { %v2060_v47 = vpop.permute.xlu1 %2059  ;;  %v2058_v49 = vpop.permute.xlu0 %2057  ;;  %3322 = vmatpush3.bf16.msra.mxu0 %v3437_v0 }
 0xa2f   : > { %2083 = vst.msk [vmem:[#allocation2 + $0x4] sm:$0xf] %vm2081_vm6, %v2060_v47  ;;  %2082 = vst.msk [vmem:[#allocation2] sm:$0xf] %vm2081_vm6, %v2058_v49  ;;  %v2402_v50 = vpack.c.bf16 %v2398_v46, %v2397_v44  ;;  %3323 = vmatprep.subr.bf16.mxu0 %v3438_v35 }
 0xa31   : > { %3318 = vmatmul.mubr.msk.bf16.vlgmr.msra.gmra.mxu1 %vm652_vm3, %v2402_v50 }
 0xa32   : > { %v2064_v51 = vpop.permute.xlu1 %2063  ;;  %v2062_v14 = vpop.permute.xlu0 %2061  ;;  %3324 = vmatpush3.bf16.msra.mxu0 %v3438_v35 }
 0xa33   : > { %2085 = vst.msk [vmem:[#allocation2 + $0xc] sm:$0xf] %vm2081_vm6, %v2064_v51  ;;  %2084 = vst.msk [vmem:[#allocation2 + $0x8] sm:$0xf] %vm2081_vm6, %v2062_v14 }
 0xa36   : > { %v1510_v52 = vpop.permute.xlu1 %1509  ;;  %v1508_v53 = vpop.permute.xlu0 %1507 }
 0xa37   : > { %1529 = vst.msk [vmem:[#allocation2 + $0x14] sm:$0xf] %vm1523_vm5, %v1510_v52  ;;  %1528 = vst.msk [vmem:[#allocation2 + $0x10] sm:$0xf] %vm1523_vm5, %v1508_v53 }
 0xa3a   : > { %v1514_v54 = vpop.permute.xlu1 %1513  ;;  %v1512_v55 = vpop.permute.xlu0 %1511 }
 0xa3b   : > { %1531 = vst.msk [vmem:[#allocation2 + $0x1c] sm:$0xf] %vm1523_vm5, %v1514_v54  ;;  %1530 = vst.msk [vmem:[#allocation2 + $0x18] sm:$0xf] %vm1523_vm5, %v1512_v55 }
 0xa3e   : > { %v2068_v56 = vpop.permute.xlu1 %2067  ;;  %v2066_v57 = vpop.permute.xlu0 %2065 }
 0xa3f   : > { %2087 = vst.msk [vmem:[#allocation2 + $0x14] sm:$0xf] %vm2081_vm6, %v2068_v56  ;;  %2086 = vst.msk [vmem:[#allocation2 + $0x10] sm:$0xf] %vm2081_vm6, %v2066_v57 }
 0xa42   : > { %v2072_v58 = vpop.permute.xlu1 %2071  ;;  %v2070_v60 = vpop.permute.xlu0 %2069 }
 0xa43   : > { %2089 = vst.msk [vmem:[#allocation2 + $0x1c] sm:$0xf] %vm2081_vm6, %v2072_v58  ;;  %2088 = vst.msk [vmem:[#allocation2 + $0x18] sm:$0xf] %vm2081_vm6, %v2070_v60 }
 0xae4   : > { %v2443_v63 = vpop.f32.mrf.mxu0 }
 0xae5   : > { %v3031_v3 = vpack.c.bf16 %v2443_v63, %v2443_v63 }
 0xae6   : > { %v3301_v4 = vpop.f32.mrf.mxu0 }
 0xae7   : > { %2615 = vrot.lane.b32.xlu0 %v3031_v3, %s3774_s20 }
 0xae8   : > { %v2446_v32 = vpop.f32.mrf.mxu0 }
 0xae9   : > { %v3032_v34 = vpack.c.bf16 %v2446_v32, %v2446_v32  ;;  %v2490_v17 = vpop.f32.mrf.mxu1 }
 0xaea   : > { %v3302_v19 = vpop.f32.mrf.mxu0  ;;  %v3033_v23 = vpack.c.bf16 %v2490_v17, %v2490_v17 }
 0xaeb   : > { %2617 = vrot.lane.b32.xlu1 %v3032_v34, %s3774_s20  ;;  %v3307_v21 = vpop.f32.mrf.mxu1 }
 0xaec   : > { %2619 = vrot.lane.b32.xlu0 %v3033_v23, %s3774_s20 }
 0xaed   : > { %v2493_v61 = vpop.f32.mrf.mxu1  ;;  %v2537_v59 = vpop.f32.mrf.mxu0 }
 0xaee   : > { %v3034_v27 = vpack.c.bf16 %v2493_v61, %v2493_v61  ;;  %v3035_v62 = vpack.c.bf16 %v2537_v59, %v2537_v59 }
 0xaef   : > { %v3308_v36 = vpop.f32.mrf.mxu1  ;;  %v3313_v24 = vpop.f32.mrf.mxu0 }
 0xaf0   : > { %2623 = vrot.lane.b32.xlu0 %v3035_v62, %s3774_s20  ;;  %2621 = vrot.lane.b32.xlu1 %v3034_v27, %s3774_s20 }
 0xaf1   : > { %v2540_v1 = vpop.f32.mrf.mxu0  ;;  %v2584_v5 = vpop.f32.mrf.mxu1 }
 0xaf2   : > { %v3036_v7 = vpack.c.bf16 %v2540_v1, %v2540_v1  ;;  %v3037_v28 = vpack.c.bf16 %v2584_v5, %v2584_v5 }
 0xaf3   : > { %v3314_v8 = vpop.f32.mrf.mxu0  ;;  %v3319_v10 = vpop.f32.mrf.mxu1 }
 0xaf4   : > { %2625 = vrot.lane.b32.xlu1 %v3036_v7, %s3774_s20  ;;  %2627 = vrot.lane.b32.xlu0 %v3037_v28, %s3774_s20 }
 0xaf5   : > { %v2587_v9 = vpop.f32.mrf.mxu1 }
 0xaf6   : > { %v3038_v2 = vpack.c.bf16 %v2587_v9, %v2587_v9 }
 0xaf7   : > { %v3320_v11 = vpop.f32.mrf.mxu1 }
 0xaf8   : > { %2629 = vrot.lane.b32.xlu1 %v3038_v2, %s3774_s20 }
 0xb59   : > { %v2616_v13 = vpop.permute.xlu0 %2615 }
 0xb5a   : > { %2640 = vst.msk [vmem:[#allocation2] sm:$0xf] %vm2639_vm7, %v2616_v13 }
 0xb5d   : > { %v2618_v15 = vpop.permute.xlu1 %2617 }
 0xb5e   : > { %2641 = vst.msk [vmem:[#allocation2 + $0x4] sm:$0xf] %vm2639_vm7, %v2618_v15  ;;  %v2620_v6 = vpop.permute.xlu0 %2619 }
 0xb5f   : > { %2642 = vst.msk [vmem:[#allocation2 + $0x8] sm:$0xf] %vm2639_vm7, %v2620_v6 }
 0xb62   : > { %v2622_v16 = vpop.permute.xlu1 %2621  ;;  %v2624_v18 = vpop.permute.xlu0 %2623 }
 0xb63   : > { %2643 = vst.msk [vmem:[#allocation2 + $0xc] sm:$0xf] %vm2639_vm7, %v2622_v16  ;;  %2644 = vst.msk [vmem:[#allocation2 + $0x10] sm:$0xf] %vm2639_vm7, %v2624_v18 }
 0xb65   : > { %v3439_v20 = vld [vmem:[#allocation2] sm:$0xff]  }
 0xb66   : > { %v2626_v22 = vpop.permute.xlu1 %2625  ;;  %v2628_v25 = vpop.permute.xlu0 %2627  ;;  %3325 = vmatprep.mubr.msk.bf16.mxu0 %vm353_vm0, %v3439_v20 }
 0xb67   : > { %2645 = vst.msk [vmem:[#allocation2 + $0x14] sm:$0xf] %vm2639_vm7, %v2626_v22  ;;  %2646 = vst.msk [vmem:[#allocation2 + $0x18] sm:$0xf] %vm2639_vm7, %v2628_v25 }
 0xb6a   : > { %v2630_v30 = vpop.permute.xlu1 %2629  ;;  %v3440_v33 = vld [vmem:[#allocation2 + $0x8] sm:$0xff]  }
 0xb6b   : > { %2647 = vst.msk [vmem:[#allocation2 + $0x1c] sm:$0xf] %vm2639_vm7, %v2630_v30  ;;  %3326 = vmatmul.mubr.msk.bf16.vlgmr.msra.gmra.mxu0 %vm353_vm0, %v3440_v33 }
 0xb6e   : > { %v3441_v37 = vld [vmem:[#allocation2 + $0x10] sm:$0xff]  }
 0xb6f   : > { %3329 = vmatprep.mubr.msk.bf16.mxu0 %vm353_vm0, %v3441_v37 }
 0xb72   : > { %v3442_v39 = vld [vmem:[#allocation2 + $0x18] sm:$0xff]  }
 0xb73   : > { %3330 = vmatmul.mubr.msk.bf16.gmra.mxu0 %vm353_vm0, %v3442_v39 }
 0xc2b   : > { %v3327_v31 = vpop.f32.mrf.mxu0 }
 0xc2c   : > { %v2754_v12 = vadd.f32 %v3327_v31, %v2988_v40 }
 0xc2d   : > { %v2745_v41 = vpop.f32.mrf.mxu0 }
 0xc2e   : > { %2778 = vst.msk [vmem:[%s314_s19 + $0x10] sm:$0xff] %vm353_vm0, %v2754_v12  ;;  %v2746_v42 = vadd.f32 %v2988_v40, %v2745_v41 }
 0xc2f   : > { %v3328_v43 = vpop.f32.mrf.mxu0 }
 0xc30   : > { %2776 = vst.msk [vmem:[%s314_s19] sm:$0xff] %vm353_vm0, %v2746_v42  ;;  %v2757_v26 = vadd.f32 %v3328_v43, %v2988_v40 }
 0xc31   : > { %v2748_v29 = vpop.f32.mrf.mxu0 }
 0xc32   : > { %2779 = vst.msk [vmem:[%s314_s19 + $0x18] sm:$0xff] %vm353_vm0, %v2757_v26  ;;  %v2749_v45 = vadd.f32 %v2988_v40, %v2748_v29 }
 0xc33   : > { %v3331_v48 = vpop.f32.mrf.mxu0 }
 0xc34   : > { %2777 = vst.msk [vmem:[%s314_s19 + $0x8] sm:$0xff] %vm353_vm0, %v2749_v45  ;;  %v2770_v38 = vadd.f32 %v3331_v48, %v2988_v40 }
 0xc35   : > { %v2761_v44 = vpop.f32.mrf.mxu0 }
 0xc36   : > { %2782 = vst.msk [vmem:[%s314_s19 + $0x30] sm:$0xff] %vm353_vm0, %v2770_v38  ;;  %v2762_v46 = vadd.f32 %v2988_v40, %v2761_v44 }
 0xc37   : > { %v3332_v47 = vpop.f32.mrf.mxu0 }
 0xc38   : > { %2780 = vst.msk [vmem:[%s314_s19 + $0x20] sm:$0xff] %vm353_vm0, %v2762_v46  ;;  %v2773_v49 = vadd.f32 %v3332_v47, %v2988_v40 }
 0xc39   : > { %v2764_v50 = vpop.f32.mrf.mxu0 }
 0xc3a   : > { %2783 = vst.msk [vmem:[%s314_s19 + $0x38] sm:$0xff] %vm353_vm0, %v2773_v49  ;;  %v2765_v51 = vadd.f32 %v2988_v40, %v2764_v50 }
 0xc3c   : > { %2781 = vst.msk [vmem:[%s314_s19 + $0x28] sm:$0xff] %vm353_vm0, %v2765_v51 }
 0xc3d   : > { %3690 = shalt.err (!%p3687_p9)
}
 0xc3e   : > { %s3691_s20 = scalar_lea.hbm %s4453_s14, 1024  ;;  %s3695_s19 = scalar_lea.hbm %s4507_s6, 2048 }
 0xc3f   : > { %p3692_p1 = scmp.ne.s32.totalorder %s4453_s14, %s3691_s20  ;;  %p3696_p11 = scmp.lt.s32.totalorder %s4453_s14, %s4507_s6 }
 0xc40   : > { %p3697_p13 = scmp.lt.s32.totalorder %s3695_s19, %s3691_s20 }
 0xc41   : > { %p3693_p8 = pnand %p3692_p1, %p4529_p6 }
 0xc42   : > { %p3698_p2 = por %p3697_p13, %p3696_p11 }
 0xc43   : > { %p3694_p10 = pneg %p3693_p8 }
 0xc45   : > { %p3699_p4 = pnand %p3698_p2, %p3694_p10 }
 0xc47   : > { %3702 = shalt.err (!%p3699_p4)
}
 0xc48   : > { %s3776_s17 = smov 128  }
 0xc49   : > { %3351 = dma.vmem_to_hbm [thread:$0]  (%p4529_p6), %s4456_s26, 1024, %s4453_s14, %s2785_s25, %s3776_s17, %s3776_s17, %s3772_s27  }
 0xc4a PF: > { %s2814_s18 = sand.u32 1, %s3737_s21   ;;  %p4530_p12 = scmp.ne.s32.totalorder %s4515_s28, 0 }
 0xc4b   : > { %p4531_p0 = scmp.ge.s32.totalorder %s3749_s24, 2  ;;  %s2815_s12 = scalar_lea.sflag [#allocation5], %s2814_s18 }
 0xc4d   : > { %p3368_p5 = pnand %p4531_p0, %p4530_p12 }
 0xc4f   : > { %p3369_p3 = pneg %p3368_p5 }
 0xc51   : > { %3732 = dma.done.wait (%p3369_p3), %s2815_s12, 1024  }
 0xc52   : > { %3734 = vsyncadd (%p3369_p3), %s2815_s12, 4294966272  ;;  %p21_p7 = scmp.ge.s32.totalorder %s3895_s11, 4   ;;  %s4532_s21 = smov %s3741_s22 }
 0xc53   : > { %s4533_s22 = smov %s3745_s23  ;;  %s4534_s23 = smov %s3905_s15 }
 0xc54   : > { %s4535_s24 = smov %s3895_s11  ;;  %23 = sbr.rel (!%p21_p7) target bundleno = 7 (0x7), region = 104 }
 0xc59   :  { %2820 = vsyncpa [#allocation4], 1 }
 0xc5a   :  { %2822 = vsyncpa [#allocation4 + $0x1], 1 }
 0xc5b   :  { %2823 = vsyncpa [#allocation7], 1 }
 0xc5c   :  { %2824 = vsyncpa [#allocation10], 1 }
 0xc5d   :  { %2825 = vsyncpa [#allocation5], 1 }
 0xc5e   :  { %2827 = vsyncpa [#allocation5 + $0x1], 1 }

</bundles_post_ra>
